<compile_context>
chip_gen: v5e
topology: v5e:2x2
jax: 0.10.0
libtpu: 0.0.40
codegen_flags: <defaults>
</compile_context>

<pallas_src>
import math

import numpy as np
import jax
import jax.numpy as jnp
from jax import lax
from jax.experimental import pallas as pl
from jax.experimental.pallas import tpu as pltpu

# Small, module-consistent hyperparameters.
INPUT_DIM = 4
EMBED = 32
HEADS = 4
HEAD_DIM = EMBED // HEADS
LAYERS = 3
FWD_EXP = 4
HIDDEN = FWD_EXP * EMBED
SEQ = 8
BATCH = 2
EPS = 1e-5  # nn.LayerNorm default


def _layer_norm(x, g, b):
    mu = jnp.mean(x, axis=-1, keepdims=True)
    var = jnp.mean((x - mu) ** 2, axis=-1, keepdims=True)
    return (x - mu) * lax.rsqrt(var + EPS) * g + b


def sttre_kernel(h_ref, w_ref, w2_ref, vb_ref, kmask_ref, sbias_ref, o_ref):
    """One grid step processes R = (batch_block * SEQ) rows at once.

    Ref shapes (per step):
      h_ref     (R, E)        f32   embedding + positional encoding (pre-computed)
      w_ref     (L, E, 8E)    bf16  per layer: [Wq/sqrt(E) | Wk | Wv (block-diag) | Wo | W1]
      w2_ref    (L, 4E, E)    bf16  per layer FFN second weight
      vb_ref    (L, 8, 4E)    f32   rows: bo,g1,bt1,g2,bt2,b2 (lanes 0:E), row6 = b1
      kmask_ref (H*R, E)      f32   head-keep mask: row a keeps lanes of head a//R
      sbias_ref (R, H*R)      f32   additive cross-batch score mask (0 / -1e30)
      o_ref     (R, E)        f32   lane-dense encoder output slab
    """
    R = h_ref.shape[0]
    E = EMBED
    H = HEADS
    f32 = jnp.float32
    bf16 = jnp.bfloat16

    h = h_ref[...]                              # (R, E) f32 running activations
    kmask = kmask_ref[...]                      # (HR, E) f32, resident constant
    sbias = sbias_ref[...]                      # (R, HR) f32, resident constant
    kmask_b = kmask.astype(bf16)

    for l in range(LAYERS):
        Wl = w_ref[l]            # (E, 8E)  bf16, resident in VMEM
        W2l = w2_ref[l]          # (4E, E)  bf16
        vec = vb_ref[l]          # (8, 4E)  f32
        bo, g1, bt1 = vec[0:1, 0:E], vec[1:2, 0:E], vec[2:3, 0:E]
        g2, bt2, b2 = vec[3:4, 0:E], vec[4:5, 0:E], vec[5:6, 0:E]
        b1 = vec[6:7, :]         # (1, 4E)

        hb = h.astype(bf16)
        # Fused Q|K|V projection: one (R,E)@(E,3E) MXU issue per layer.
        # 1/sqrt(E) is already folded into the packed Wq.
        qkv = jnp.dot(hb, Wl[:, 0:3 * E], preferred_element_type=f32)   # (R, 3E)
        q, k, v = qkv[:, 0:E], qkv[:, E:2 * E], qkv[:, 2 * E:3 * E]

        # Stacked-(batch x head) attention: all heads in two large matmuls.
        k_exp = (jnp.tile(k, (H, 1)) * kmask).astype(bf16)              # (HR, E)
        v_exp = (jnp.tile(v, (H, 1)) * kmask).astype(bf16)              # (HR, E)
        scores = lax.dot_general(                                        # (R, HR)
            q.astype(bf16), k_exp,
            (((1,), (1,)), ((), ())), preferred_element_type=f32)
        scores = scores + sbias
        scores = scores - jnp.max(scores, axis=-1, keepdims=True)
        p = jnp.exp(scores)                  # masked entries underflow to exactly 0
        pb = p.astype(bf16)
        # Per-head softmax denominator expanded to (R,E) with the SAME head mask;
        # normalization applied AFTER the PV matmul (no (HR,HR) matrix, no (R,HR)
        # reciprocal).
        denom = jnp.dot(pb, kmask_b, preferred_element_type=f32)        # (R, E)
        attn = jnp.dot(pb, v_exp, preferred_element_type=f32)           # (R, E)
        attn = attn * pl.reciprocal(denom, approx=False)

        # Attention output projection + residual + LayerNorm 1 (dropout = identity).
        attn = jnp.dot(attn.astype(bf16), Wl[:, 3 * E:4 * E],
                       preferred_element_type=f32) + bo
        x1 = _layer_norm(attn + h, g1, bt1)

        # Feed-forward: Linear -> ReLU -> Linear, then residual + LayerNorm 2.
        f = jnp.dot(x1.astype(bf16), Wl[:, 4 * E:8 * E],
                    preferred_element_type=f32) + b1
        f = jnp.maximum(f, 0.0)
        f = jnp.dot(f.astype(bf16), W2l, preferred_element_type=f32) + b2
        h = _layer_norm(f + x1, g2, bt2)

    o_ref[...] = h


def init_params(key):
    """Deterministic synthetic parameters matching the PyTorch module's shapes."""
    ks = jax.random.split(key, 8)

    def u(k, shape, fan_in):
        bound = 1.0 / math.sqrt(fan_in)
        return jax.random.uniform(k, shape, jnp.float32, -bound, bound)

    p = {}
    # nn.Linear(input_dim, embed): stored transposed so y = x @ we + be.
    p['we'] = u(ks[0], (INPUT_DIM, EMBED), INPUT_DIM)
    p['be'] = u(ks[1], (EMBED,), INPUT_DIM)

    # Sinusoidal positional encoding pe[:seq].
    pos = jnp.arange(SEQ, dtype=jnp.float32)[:, None]
    div = jnp.exp(jnp.arange(0, EMBED, 2, dtype=jnp.float32) *
                  (-math.log(10000.0) / EMBED))
    pe = jnp.zeros((SEQ, EMBED), jnp.float32)
    pe = pe.at[:, 0::2].set(jnp.sin(pos * div))
    pe = pe.at[:, 1::2].set(jnp.cos(pos * div))
    p['pe'] = pe

    layers = []
    for l in range(LAYERS):
        kl = jax.random.split(ks[2 + l], 16)
        layers.append(dict(
            # per-head Linear(head_dim, head_dim, bias=False), torch (out,in) layout
            wq=u(kl[0], (HEAD_DIM, HEAD_DIM), HEAD_DIM),
            wk=u(kl[1], (HEAD_DIM, HEAD_DIM), HEAD_DIM),
            wv=u(kl[2], (HEAD_DIM, HEAD_DIM), HEAD_DIM),
            # fc_out: Linear(E, E)
            wo=u(kl[3], (EMBED, EMBED), EMBED),
            bo=u(kl[4], (EMBED,), EMBED),
            # LayerNorms (affine init: gamma=1, beta=0)
            g1=jnp.ones((EMBED,), jnp.float32), bt1=jnp.zeros((EMBED,), jnp.float32),
            g2=jnp.ones((EMBED,), jnp.float32), bt2=jnp.zeros((EMBED,), jnp.float32),
            # feed-forward: Linear(E, 4E) -> ReLU -> Linear(4E, E)
            w1=u(kl[5], (HIDDEN, EMBED), EMBED), b1=u(kl[6], (HIDDEN,), EMBED),
            w2=u(kl[7], (EMBED, HIDDEN), HIDDEN), b2=u(kl[8], (EMBED,), HIDDEN),
        ))
    p['layers'] = layers

    # Final fc_out: Linear(E, 1), stored transposed.
    p['wf'] = u(ks[5], (EMBED, 1), EMBED)
    p['bf'] = u(ks[6], (1,), EMBED)
    return p


def _choose_bps(n, s, target_rows=256):
    """Batch elements per grid step.

    Largest divisor of n whose row slab (bps*s) fits target_rows (fills MXU M),
    but capped so the grid keeps >= 2 steps whenever n >= 2 (v7x has two
    TensorCores; a 1-step grid leaves one idle and kills DMA pipelining).
    On v5e, target_rows could be lowered to ~128 (its MXU M is 128).
    """
    best = 1
    for d in range(1, n + 1):
        if n % d:
            continue
        if d * s > target_rows:
            continue
        if n // d < 2 and n > 1:
            continue
        best = d
    return best


def pack_params(params, batch, seq, target_rows=256):
    """ONE-TIME host-side packing: weight blobs, mask constants, tiling choice.

    Returns a pytree of device arrays; call this outside the jitted per-call
    path (repacking per call would dominate end-to-end latency).
    """
    bps = _choose_bps(batch, seq, target_rows)
    R = bps * seq
    HR = HEADS * R
    inv_scale = 1.0 / math.sqrt(EMBED)   # PyTorch: energy / embed_size ** 0.5

    bd = lambda w: jax.scipy.linalg.block_diag(*([w.T] * HEADS))  # shared per-head Linear
    w_blob, w2_blob, vb_blob = [], [], []
    for lp in params['layers']:
        w_blob.append(jnp.concatenate(
            [bd(lp['wq']) * inv_scale,          # score scale baked into Wq
             bd(lp['wk']), bd(lp['wv']), lp['wo'].T, lp['w1'].T], axis=1))
        w2_blob.append(lp['w2'].T)
        rows = jnp.zeros((8, HIDDEN), jnp.float32)
        rows = rows.at[0:6, 0:EMBED].set(jnp.stack(
            [lp['bo'], lp['g1'], lp['bt1'], lp['g2'], lp['bt2'], lp['b2']], axis=0))
        rows = rows.at[6, :].set(lp['b1'])
        vb_blob.append(rows)                   # (8, 4E) lane-dense bias/LN blob

    # Attention mask constants (hoisted out of the kernel, DMA'd once, resident).
    row_head = np.arange(HR)[:, None] // R                      # head of key row a
    lane_head = np.arange(EMBED)[None, :] // HEAD_DIM           # head of lane e
    kmask = (row_head == lane_head).astype(np.float32)          # (HR, E)
    q_batch = np.arange(R)[:, None] // seq
    k_batch = (np.arange(HR)[None, :] % R) // seq
    sbias = np.where(q_batch == k_batch, 0.0, -1e30).astype(np.float32)  # (R, HR)

    return dict(
        w_blob=jnp.stack(w_blob).astype(jnp.bfloat16),      # (L, E, 8E)
        w2_blob=jnp.stack(w2_blob).astype(jnp.bfloat16),    # (L, 4E, E)
        vb_blob=jnp.stack(vb_blob),                         # (L, 8, 4E)  f32
        kmask=jnp.asarray(kmask),                           # (HR, E)     f32
        sbias=jnp.asarray(sbias),                           # (R, HR)     f32
        we=params['we'], be=params['be'], pe=params['pe'],  # wrapper-side embedding
        wf=params['wf'], bf=params['bf'],                   # wrapper-side head
    )


def sttre_forward(x, kp):
    """x: (N, SEQ, INPUT_DIM) f32 -> (N, SEQ, 1) f32.  src_mask = None, eval mode."""
    N, S, Din = x.shape
    E = EMBED
    R = kp['sbias'].shape[0]          # rows per grid step (static, chosen at pack time)
    HR = HEADS * R
    nb = (N * S) // R                 # >= 2 whenever N >= 2 (see _choose_bps)

    # Embedding + positional encoding in XLA (dropout == identity in eval mode):
    # keeps the kernel free of the degenerate (R,4)@(4,32) matmul and its
    # sub-(8,128) input layout.
    h0 = (x.reshape(N * S, Din) @ kp['we'] + kp['be'][None, :]
          + jnp.tile(kp['pe'], (N, 1)))                                  # (N*S, E) f32

    in_specs = [
        pl.BlockSpec((R, E), lambda i: (i, 0)),                          # embedded rows
        pl.BlockSpec((LAYERS, E, 8 * E), lambda i: (0, 0, 0)),           # fused weights
        pl.BlockSpec((LAYERS, HIDDEN, E), lambda i: (0, 0, 0)),          # FFN W2
        pl.BlockSpec((LAYERS, 8, HIDDEN), lambda i: (0, 0, 0)),          # bias/LN blob
        pl.BlockSpec((HR, E), lambda i: (0, 0)),                         # head-keep mask
        pl.BlockSpec((R, HR), lambda i: (0, 0)),                         # score bias
    ]
    out_spec = pl.BlockSpec((R, E), lambda i: (i, 0))

    enc = pl.pallas_call(
        sttre_kernel,
        out_shape=jax.ShapeDtypeStruct((N * S, E), jnp.float32),
        grid_spec=pltpu.PrefetchScalarGridSpec(
            num_scalar_prefetch=0,
            grid=(nb,),
            in_specs=in_specs,
            out_specs=out_spec,
        ),
        compiler_params=pltpu.CompilerParams(
            dimension_semantics=("parallel",)),
    )(h0, kp['w_blob'], kp['w2_blob'], kp['vb_blob'], kp['kmask'], kp['sbias'])

    # Final Linear(EMBED, 1): trivial E->1 projection done in XLA so the kernel
    # output stays lane-dense (avoids width-1 masked stores).
    out = enc @ kp['wf'] + kp['bf']
    return out.reshape(N, S, 1)


def sttre_reference(x, p):
    """Pure-JAX f32 reference replicating the PyTorch module (eval, src_mask=None)."""
    N, S, _ = x.shape
    h = x @ p['we'] + p['be'] + p['pe'][None]
    inv_scale = 1.0 / math.sqrt(EMBED)
    for lp in p['layers']:
        hh = h.reshape(N, S, HEADS, HEAD_DIM)
        q = jnp.einsum('nshd,ed->nshe', hh, lp['wq'])
        k = jnp.einsum('nshd,ed->nshe', hh, lp['wk'])
        v = jnp.einsum('nshd,ed->nshe', hh, lp['wv'])
        energy = jnp.einsum('nqhd,nkhd->nhqk', q, k)
        att = jax.nn.softmax(energy * inv_scale, axis=3)
        out = jnp.einsum('nhqk,nkhd->nqhd', att, v).reshape(N, S, EMBED)
        out = out @ lp['wo'].T + lp['bo']
        x1 = _layer_norm(out + h, lp['g1'], lp['bt1'])
        f = jnp.maximum(x1 @ lp['w1'].T + lp['b1'], 0.0)
        f = f @ lp['w2'].T + lp['b2']
        h = _layer_norm(f + x1, lp['g2'], lp['bt2'])
    return (h @ p['wf'] + p['bf']).reshape(N, S, 1)


if __name__ == "__main__":
    key = jax.random.PRNGKey(0)
    pkey, xkey = jax.random.split(key)
    params = init_params(pkey)
    x = jax.random.normal(xkey, (BATCH, SEQ, INPUT_DIM), dtype=jnp.float32)

    # One-time packing (weights, masks, tiling) hoisted out of the call path.
    packed = pack_params(params, BATCH, SEQ)
    forward = jax.jit(sttre_forward)

    out = forward(x, packed)                 # src_mask = None
    out = jax.block_until_ready(out)

    assert out.shape == (BATCH, SEQ, 1), out.shape
    assert bool(jnp.all(jnp.isfinite(out)))

    # bf16 MXU operands (f32 accumulation) vs pure-f32 reference; the softmax
    # denominator now uses an exact reciprocal, so the tolerance is tightened.
    ref = sttre_reference(x, params)
    err = float(jnp.max(jnp.abs(out - ref)))
    assert bool(jnp.allclose(out, ref, atol=1e-1, rtol=1e-1)), err

    print("KERNEL_OK")
</pallas_src>

<mosaic_0001>
module attributes {stable_mosaic.version = 11 : i64} {
  func.func @sttre_kernel(%arg0: i32, %arg1: memref<8x32xf32, #tpu.memory_space<vmem>>, %arg2: memref<3x32x256xbf16, #tpu.memory_space<vmem>>, %arg3: memref<3x128x32xbf16, #tpu.memory_space<vmem>>, %arg4: memref<3x8x128xf32, #tpu.memory_space<vmem>>, %arg5: memref<32x32xf32, #tpu.memory_space<vmem>>, %arg6: memref<8x32xf32, #tpu.memory_space<vmem>>, %arg7: memref<8x32xf32, #tpu.memory_space<vmem>>) attributes {dimension_semantics = [#tpu.dimension_semantics<parallel>], iteration_bounds = array<i64: 2>, scalar_prefetch = 0 : i64, scratch_operands = 0 : i64, tpu.core_type = #tpu.core_type<tc>, window_params = [{transform_indices = @transform_0, window_bounds = array<i64: 8, 32>}, {pipeline_mode = #tpu.pipeline_mode<synchronous>, transform_indices = @transform_1, window_bounds = array<i64: 3, 32, 256>}, {pipeline_mode = #tpu.pipeline_mode<synchronous>, transform_indices = @transform_2, window_bounds = array<i64: 3, 128, 32>}, {pipeline_mode = #tpu.pipeline_mode<synchronous>, transform_indices = @transform_3, window_bounds = array<i64: 3, 8, 128>}, {pipeline_mode = #tpu.pipeline_mode<synchronous>, transform_indices = @transform_4, window_bounds = array<i64: 32, 32>}, {pipeline_mode = #tpu.pipeline_mode<synchronous>, transform_indices = @transform_5, window_bounds = array<i64: 8, 32>}, {transform_indices = @transform_6, window_bounds = array<i64: 8, 32>}]} {
    %c0 = arith.constant 0 : index
    %c0_0 = arith.constant 0 : index
    %0 = vector.load %arg1[%c0, %c0_0] : memref<8x32xf32, #tpu.memory_space<vmem>>, vector<8x32xf32>
    %c0_1 = arith.constant 0 : index
    %c0_2 = arith.constant 0 : index
    %1 = vector.load %arg5[%c0_1, %c0_2] : memref<32x32xf32, #tpu.memory_space<vmem>>, vector<32x32xf32>
    %c0_3 = arith.constant 0 : index
    %c0_4 = arith.constant 0 : index
    %2 = vector.load %arg6[%c0_3, %c0_4] : memref<8x32xf32, #tpu.memory_space<vmem>>, vector<8x32xf32>
    %3 = arith.truncf %1 : vector<32x32xf32> to vector<32x32xbf16>
    %c0_5 = arith.constant 0 : index
    %c0_6 = arith.constant 0 : index
    %c0_7 = arith.constant 0 : index
    %4 = vector.load %arg2[%c0_5, %c0_6, %c0_7] : memref<3x32x256xbf16, #tpu.memory_space<vmem>>, vector<1x32x256xbf16>
    %5 = vector.shape_cast %4 : vector<1x32x256xbf16> to vector<32x256xbf16>
    %c0_8 = arith.constant 0 : index
    %c0_9 = arith.constant 0 : index
    %c0_10 = arith.constant 0 : index
    %6 = vector.load %arg3[%c0_8, %c0_9, %c0_10] : memref<3x128x32xbf16, #tpu.memory_space<vmem>>, vector<1x128x32xbf16>
    %7 = vector.shape_cast %6 : vector<1x128x32xbf16> to vector<128x32xbf16>
    %c0_11 = arith.constant 0 : index
    %c0_12 = arith.constant 0 : index
    %c0_13 = arith.constant 0 : index
    %8 = vector.load %arg4[%c0_11, %c0_12, %c0_13] : memref<3x8x128xf32, #tpu.memory_space<vmem>>, vector<1x8x128xf32>
    %9 = vector.shape_cast %8 : vector<1x8x128xf32> to vector<8x128xf32>
    %10 = vector.extract_strided_slice %9 {offsets = [0, 0], sizes = [1, 32], strides = [1, 1]} : vector<8x128xf32> to vector<1x32xf32>
    %11 = vector.extract_strided_slice %9 {offsets = [1, 0], sizes = [1, 32], strides = [1, 1]} : vector<8x128xf32> to vector<1x32xf32>
    %12 = vector.extract_strided_slice %9 {offsets = [2, 0], sizes = [1, 32], strides = [1, 1]} : vector<8x128xf32> to vector<1x32xf32>
    %13 = vector.extract_strided_slice %9 {offsets = [3, 0], sizes = [1, 32], strides = [1, 1]} : vector<8x128xf32> to vector<1x32xf32>
    %14 = vector.extract_strided_slice %9 {offsets = [4, 0], sizes = [1, 32], strides = [1, 1]} : vector<8x128xf32> to vector<1x32xf32>
    %15 = vector.extract_strided_slice %9 {offsets = [5, 0], sizes = [1, 32], strides = [1, 1]} : vector<8x128xf32> to vector<1x32xf32>
    %16 = vector.extract_strided_slice %9 {offsets = [6, 0], sizes = [1, 128], strides = [1, 1]} : vector<8x128xf32> to vector<1x128xf32>
    %17 = arith.truncf %0 : vector<8x32xf32> to vector<8x32xbf16>
    %18 = vector.extract_strided_slice %5 {offsets = [0, 0], sizes = [32, 96], strides = [1, 1]} : vector<32x256xbf16> to vector<32x96xbf16>
    %cst = arith.constant dense<0.000000e+00> : vector<8x96xf32>
    %19 = tpu.matmul %17, %18, %cst {dimension_numbers = #tpu.dot_dimension_numbers<[1], [0], [0], [1], [0, 0, 1, 1], [], []>} : vector<8x32xbf16>, vector<32x96xbf16>, vector<8x96xf32> -> vector<8x96xf32>
    %20 = vector.extract_strided_slice %19 {offsets = [0, 0], sizes = [8, 32], strides = [1, 1]} : vector<8x96xf32> to vector<8x32xf32>
    %21 = vector.extract_strided_slice %19 {offsets = [0, 32], sizes = [8, 32], strides = [1, 1]} : vector<8x96xf32> to vector<8x32xf32>
    %22 = vector.extract_strided_slice %19 {offsets = [0, 64], sizes = [8, 32], strides = [1, 1]} : vector<8x96xf32> to vector<8x32xf32>
    %23 = tpu.concatenate %21, %21, %21, %21 in 0 : vector<8x32xf32>, vector<8x32xf32>, vector<8x32xf32>, vector<8x32xf32> -> vector<32x32xf32>
    %24 = arith.mulf %23, %1 : vector<32x32xf32>
    %25 = arith.truncf %24 : vector<32x32xf32> to vector<32x32xbf16>
    %26 = tpu.concatenate %22, %22, %22, %22 in 0 : vector<8x32xf32>, vector<8x32xf32>, vector<8x32xf32>, vector<8x32xf32> -> vector<32x32xf32>
    %27 = arith.mulf %26, %1 : vector<32x32xf32>
    %28 = arith.truncf %27 : vector<32x32xf32> to vector<32x32xbf16>
    %29 = arith.truncf %20 : vector<8x32xf32> to vector<8x32xbf16>
    %cst_14 = arith.constant dense<0.000000e+00> : vector<8x32xf32>
    %30 = tpu.matmul %29, %25, %cst_14 {dimension_numbers = #tpu.dot_dimension_numbers<[1], [1], [0], [0], [0, 0, 1, 0], [], []>} : vector<8x32xbf16>, vector<32x32xbf16>, vector<8x32xf32> -> vector<8x32xf32>
    %31 = arith.addf %30, %2 : vector<8x32xf32>
    %cst_15 = arith.constant dense<0xFF800000> : vector<8xf32>
    %32 = vector.multi_reduction <maximumf>, %31, %cst_15 [1] : vector<8x32xf32> to vector<8xf32>
    %33 = vector.shape_cast %32 : vector<8xf32> to vector<8x1xf32>
    %34 = vector.broadcast %33 : vector<8x1xf32> to vector<8x32xf32>
    %35 = arith.subf %31, %34 : vector<8x32xf32>
    %36 = math.exp %35 : vector<8x32xf32>
    %37 = arith.truncf %36 : vector<8x32xf32> to vector<8x32xbf16>
    %cst_16 = arith.constant dense<0.000000e+00> : vector<8x32xf32>
    %38 = tpu.matmul %37, %3, %cst_16 {dimension_numbers = #tpu.dot_dimension_numbers<[1], [0], [0], [1], [0, 0, 1, 1], [], []>} : vector<8x32xbf16>, vector<32x32xbf16>, vector<8x32xf32> -> vector<8x32xf32>
    %cst_17 = arith.constant dense<0.000000e+00> : vector<8x32xf32>
    %39 = tpu.matmul %37, %28, %cst_17 {dimension_numbers = #tpu.dot_dimension_numbers<[1], [0], [0], [1], [0, 0, 1, 1], [], []>} : vector<8x32xbf16>, vector<32x32xbf16>, vector<8x32xf32> -> vector<8x32xf32>
    %40 = tpu.reciprocal %38 : vector<8x32xf32> -> vector<8x32xf32>
    %41 = arith.mulf %39, %40 : vector<8x32xf32>
    %42 = arith.truncf %41 : vector<8x32xf32> to vector<8x32xbf16>
    %43 = vector.extract_strided_slice %5 {offsets = [0, 96], sizes = [32, 32], strides = [1, 1]} : vector<32x256xbf16> to vector<32x32xbf16>
    %cst_18 = arith.constant dense<0.000000e+00> : vector<8x32xf32>
    %44 = tpu.matmul %42, %43, %cst_18 {dimension_numbers = #tpu.dot_dimension_numbers<[1], [0], [0], [1], [0, 0, 1, 1], [], []>} : vector<8x32xbf16>, vector<32x32xbf16>, vector<8x32xf32> -> vector<8x32xf32>
    %45 = vector.broadcast %10 : vector<1x32xf32> to vector<8x32xf32>
    %46 = arith.addf %44, %45 : vector<8x32xf32>
    %47 = arith.addf %46, %0 : vector<8x32xf32>
    %cst_19 = arith.constant dense<0.000000e+00> : vector<8xf32>
    %48 = vector.multi_reduction <add>, %47, %cst_19 [1] : vector<8x32xf32> to vector<8xf32>
    %49 = vector.shape_cast %48 : vector<8xf32> to vector<8x1xf32>
    %cst_20 = arith.constant 3.200000e+01 : f32
    %50 = vector.broadcast %cst_20 : f32 to vector<8x1xf32>
    %51 = arith.divf %49, %50 : vector<8x1xf32>
    %52 = vector.broadcast %51 : vector<8x1xf32> to vector<8x32xf32>
    %53 = arith.subf %47, %52 : vector<8x32xf32>
    %54 = arith.mulf %53, %53 : vector<8x32xf32>
    %cst_21 = arith.constant dense<0.000000e+00> : vector<8xf32>
    %55 = vector.multi_reduction <add>, %54, %cst_21 [1] : vector<8x32xf32> to vector<8xf32>
    %56 = vector.shape_cast %55 : vector<8xf32> to vector<8x1xf32>
    %cst_22 = arith.constant 3.200000e+01 : f32
    %57 = vector.broadcast %cst_22 : f32 to vector<8x1xf32>
    %58 = arith.divf %56, %57 : vector<8x1xf32>
    %59 = vector.broadcast %51 : vector<8x1xf32> to vector<8x32xf32>
    %60 = arith.subf %47, %59 : vector<8x32xf32>
    %cst_23 = arith.constant 9.99999974E-6 : f32
    %61 = vector.broadcast %cst_23 : f32 to vector<8x1xf32>
    %62 = arith.addf %58, %61 : vector<8x1xf32>
    %63 = math.rsqrt %62 : vector<8x1xf32>
    %64 = vector.broadcast %63 : vector<8x1xf32> to vector<8x32xf32>
    %65 = arith.mulf %60, %64 : vector<8x32xf32>
    %66 = vector.broadcast %11 : vector<1x32xf32> to vector<8x32xf32>
    %67 = arith.mulf %65, %66 : vector<8x32xf32>
    %68 = vector.broadcast %12 : vector<1x32xf32> to vector<8x32xf32>
    %69 = arith.addf %67, %68 : vector<8x32xf32>
    %70 = arith.truncf %69 : vector<8x32xf32> to vector<8x32xbf16>
    %71 = vector.extract_strided_slice %5 {offsets = [0, 128], sizes = [32, 128], strides = [1, 1]} : vector<32x256xbf16> to vector<32x128xbf16>
    %cst_24 = arith.constant dense<0.000000e+00> : vector<8x128xf32>
    %72 = tpu.matmul %70, %71, %cst_24 {dimension_numbers = #tpu.dot_dimension_numbers<[1], [0], [0], [1], [0, 0, 1, 1], [], []>} : vector<8x32xbf16>, vector<32x128xbf16>, vector<8x128xf32> -> vector<8x128xf32>
    %73 = vector.broadcast %16 : vector<1x128xf32> to vector<8x128xf32>
    %74 = arith.addf %72, %73 : vector<8x128xf32>
    %cst_25 = arith.constant 0.000000e+00 : f32
    %75 = vector.broadcast %cst_25 : f32 to vector<8x128xf32>
    %76 = arith.maximumf %74, %75 : vector<8x128xf32>
    %77 = arith.truncf %76 : vector<8x128xf32> to vector<8x128xbf16>
    %cst_26 = arith.constant dense<0.000000e+00> : vector<8x32xf32>
    %78 = tpu.matmul %77, %7, %cst_26 {dimension_numbers = #tpu.dot_dimension_numbers<[1], [0], [0], [1], [0, 0, 1, 1], [], []>} : vector<8x128xbf16>, vector<128x32xbf16>, vector<8x32xf32> -> vector<8x32xf32>
    %79 = vector.broadcast %15 : vector<1x32xf32> to vector<8x32xf32>
    %80 = arith.addf %78, %79 : vector<8x32xf32>
    %81 = arith.addf %80, %69 : vector<8x32xf32>
    %cst_27 = arith.constant dense<0.000000e+00> : vector<8xf32>
    %82 = vector.multi_reduction <add>, %81, %cst_27 [1] : vector<8x32xf32> to vector<8xf32>
    %83 = vector.shape_cast %82 : vector<8xf32> to vector<8x1xf32>
    %cst_28 = arith.constant 3.200000e+01 : f32
    %84 = vector.broadcast %cst_28 : f32 to vector<8x1xf32>
    %85 = arith.divf %83, %84 : vector<8x1xf32>
    %86 = vector.broadcast %85 : vector<8x1xf32> to vector<8x32xf32>
    %87 = arith.subf %81, %86 : vector<8x32xf32>
    %88 = arith.mulf %87, %87 : vector<8x32xf32>
    %cst_29 = arith.constant dense<0.000000e+00> : vector<8xf32>
    %89 = vector.multi_reduction <add>, %88, %cst_29 [1] : vector<8x32xf32> to vector<8xf32>
    %90 = vector.shape_cast %89 : vector<8xf32> to vector<8x1xf32>
    %cst_30 = arith.constant 3.200000e+01 : f32
    %91 = vector.broadcast %cst_30 : f32 to vector<8x1xf32>
    %92 = arith.divf %90, %91 : vector<8x1xf32>
    %93 = vector.broadcast %85 : vector<8x1xf32> to vector<8x32xf32>
    %94 = arith.subf %81, %93 : vector<8x32xf32>
    %cst_31 = arith.constant 9.99999974E-6 : f32
    %95 = vector.broadcast %cst_31 : f32 to vector<8x1xf32>
    %96 = arith.addf %92, %95 : vector<8x1xf32>
    %97 = math.rsqrt %96 : vector<8x1xf32>
    %98 = vector.broadcast %97 : vector<8x1xf32> to vector<8x32xf32>
    %99 = arith.mulf %94, %98 : vector<8x32xf32>
    %100 = vector.broadcast %13 : vector<1x32xf32> to vector<8x32xf32>
    %101 = arith.mulf %99, %100 : vector<8x32xf32>
    %102 = vector.broadcast %14 : vector<1x32xf32> to vector<8x32xf32>
    %103 = arith.addf %101, %102 : vector<8x32xf32>
    %c1 = arith.constant 1 : index
    %c0_32 = arith.constant 0 : index
    %c0_33 = arith.constant 0 : index
    %104 = vector.load %arg2[%c1, %c0_32, %c0_33] : memref<3x32x256xbf16, #tpu.memory_space<vmem>>, vector<1x32x256xbf16>
    %105 = vector.shape_cast %104 : vector<1x32x256xbf16> to vector<32x256xbf16>
    %c1_34 = arith.constant 1 : index
    %c0_35 = arith.constant 0 : index
    %c0_36 = arith.constant 0 : index
    %106 = vector.load %arg3[%c1_34, %c0_35, %c0_36] : memref<3x128x32xbf16, #tpu.memory_space<vmem>>, vector<1x128x32xbf16>
    %107 = vector.shape_cast %106 : vector<1x128x32xbf16> to vector<128x32xbf16>
    %c1_37 = arith.constant 1 : index
    %c0_38 = arith.constant 0 : index
    %c0_39 = arith.constant 0 : index
    %108 = vector.load %arg4[%c1_37, %c0_38, %c0_39] : memref<3x8x128xf32, #tpu.memory_space<vmem>>, vector<1x8x128xf32>
    %109 = vector.shape_cast %108 : vector<1x8x128xf32> to vector<8x128xf32>
    %110 = vector.extract_strided_slice %109 {offsets = [0, 0], sizes = [1, 32], strides = [1, 1]} : vector<8x128xf32> to vector<1x32xf32>
    %111 = vector.extract_strided_slice %109 {offsets = [1, 0], sizes = [1, 32], strides = [1, 1]} : vector<8x128xf32> to vector<1x32xf32>
    %112 = vector.extract_strided_slice %109 {offsets = [2, 0], sizes = [1, 32], strides = [1, 1]} : vector<8x128xf32> to vector<1x32xf32>
    %113 = vector.extract_strided_slice %109 {offsets = [3, 0], sizes = [1, 32], strides = [1, 1]} : vector<8x128xf32> to vector<1x32xf32>
    %114 = vector.extract_strided_slice %109 {offsets = [4, 0], sizes = [1, 32], strides = [1, 1]} : vector<8x128xf32> to vector<1x32xf32>
    %115 = vector.extract_strided_slice %109 {offsets = [5, 0], sizes = [1, 32], strides = [1, 1]} : vector<8x128xf32> to vector<1x32xf32>
    %116 = vector.extract_strided_slice %109 {offsets = [6, 0], sizes = [1, 128], strides = [1, 1]} : vector<8x128xf32> to vector<1x128xf32>
    %117 = arith.truncf %103 : vector<8x32xf32> to vector<8x32xbf16>
    %118 = vector.extract_strided_slice %105 {offsets = [0, 0], sizes = [32, 96], strides = [1, 1]} : vector<32x256xbf16> to vector<32x96xbf16>
    %cst_40 = arith.constant dense<0.000000e+00> : vector<8x96xf32>
    %119 = tpu.matmul %117, %118, %cst_40 {dimension_numbers = #tpu.dot_dimension_numbers<[1], [0], [0], [1], [0, 0, 1, 1], [], []>} : vector<8x32xbf16>, vector<32x96xbf16>, vector<8x96xf32> -> vector<8x96xf32>
    %120 = vector.extract_strided_slice %119 {offsets = [0, 0], sizes = [8, 32], strides = [1, 1]} : vector<8x96xf32> to vector<8x32xf32>
    %121 = vector.extract_strided_slice %119 {offsets = [0, 32], sizes = [8, 32], strides = [1, 1]} : vector<8x96xf32> to vector<8x32xf32>
    %122 = vector.extract_strided_slice %119 {offsets = [0, 64], sizes = [8, 32], strides = [1, 1]} : vector<8x96xf32> to vector<8x32xf32>
    %123 = tpu.concatenate %121, %121, %121, %121 in 0 : vector<8x32xf32>, vector<8x32xf32>, vector<8x32xf32>, vector<8x32xf32> -> vector<32x32xf32>
    %124 = arith.mulf %123, %1 : vector<32x32xf32>
    %125 = arith.truncf %124 : vector<32x32xf32> to vector<32x32xbf16>
    %126 = tpu.concatenate %122, %122, %122, %122 in 0 : vector<8x32xf32>, vector<8x32xf32>, vector<8x32xf32>, vector<8x32xf32> -> vector<32x32xf32>
    %127 = arith.mulf %126, %1 : vector<32x32xf32>
    %128 = arith.truncf %127 : vector<32x32xf32> to vector<32x32xbf16>
    %129 = arith.truncf %120 : vector<8x32xf32> to vector<8x32xbf16>
    %cst_41 = arith.constant dense<0.000000e+00> : vector<8x32xf32>
    %130 = tpu.matmul %129, %125, %cst_41 {dimension_numbers = #tpu.dot_dimension_numbers<[1], [1], [0], [0], [0, 0, 1, 0], [], []>} : vector<8x32xbf16>, vector<32x32xbf16>, vector<8x32xf32> -> vector<8x32xf32>
    %131 = arith.addf %130, %2 : vector<8x32xf32>
    %cst_42 = arith.constant dense<0xFF800000> : vector<8xf32>
    %132 = vector.multi_reduction <maximumf>, %131, %cst_42 [1] : vector<8x32xf32> to vector<8xf32>
    %133 = vector.shape_cast %132 : vector<8xf32> to vector<8x1xf32>
    %134 = vector.broadcast %133 : vector<8x1xf32> to vector<8x32xf32>
    %135 = arith.subf %131, %134 : vector<8x32xf32>
    %136 = math.exp %135 : vector<8x32xf32>
    %137 = arith.truncf %136 : vector<8x32xf32> to vector<8x32xbf16>
    %cst_43 = arith.constant dense<0.000000e+00> : vector<8x32xf32>
    %138 = tpu.matmul %137, %3, %cst_43 {dimension_numbers = #tpu.dot_dimension_numbers<[1], [0], [0], [1], [0, 0, 1, 1], [], []>} : vector<8x32xbf16>, vector<32x32xbf16>, vector<8x32xf32> -> vector<8x32xf32>
    %cst_44 = arith.constant dense<0.000000e+00> : vector<8x32xf32>
    %139 = tpu.matmul %137, %128, %cst_44 {dimension_numbers = #tpu.dot_dimension_numbers<[1], [0], [0], [1], [0, 0, 1, 1], [], []>} : vector<8x32xbf16>, vector<32x32xbf16>, vector<8x32xf32> -> vector<8x32xf32>
    %140 = tpu.reciprocal %138 : vector<8x32xf32> -> vector<8x32xf32>
    %141 = arith.mulf %139, %140 : vector<8x32xf32>
    %142 = arith.truncf %141 : vector<8x32xf32> to vector<8x32xbf16>
    %143 = vector.extract_strided_slice %105 {offsets = [0, 96], sizes = [32, 32], strides = [1, 1]} : vector<32x256xbf16> to vector<32x32xbf16>
    %cst_45 = arith.constant dense<0.000000e+00> : vector<8x32xf32>
    %144 = tpu.matmul %142, %143, %cst_45 {dimension_numbers = #tpu.dot_dimension_numbers<[1], [0], [0], [1], [0, 0, 1, 1], [], []>} : vector<8x32xbf16>, vector<32x32xbf16>, vector<8x32xf32> -> vector<8x32xf32>
    %145 = vector.broadcast %110 : vector<1x32xf32> to vector<8x32xf32>
    %146 = arith.addf %144, %145 : vector<8x32xf32>
    %147 = arith.addf %146, %103 : vector<8x32xf32>
    %cst_46 = arith.constant dense<0.000000e+00> : vector<8xf32>
    %148 = vector.multi_reduction <add>, %147, %cst_46 [1] : vector<8x32xf32> to vector<8xf32>
    %149 = vector.shape_cast %148 : vector<8xf32> to vector<8x1xf32>
    %cst_47 = arith.constant 3.200000e+01 : f32
    %150 = vector.broadcast %cst_47 : f32 to vector<8x1xf32>
    %151 = arith.divf %149, %150 : vector<8x1xf32>
    %152 = vector.broadcast %151 : vector<8x1xf32> to vector<8x32xf32>
    %153 = arith.subf %147, %152 : vector<8x32xf32>
    %154 = arith.mulf %153, %153 : vector<8x32xf32>
    %cst_48 = arith.constant dense<0.000000e+00> : vector<8xf32>
    %155 = vector.multi_reduction <add>, %154, %cst_48 [1] : vector<8x32xf32> to vector<8xf32>
    %156 = vector.shape_cast %155 : vector<8xf32> to vector<8x1xf32>
    %cst_49 = arith.constant 3.200000e+01 : f32
    %157 = vector.broadcast %cst_49 : f32 to vector<8x1xf32>
    %158 = arith.divf %156, %157 : vector<8x1xf32>
    %159 = vector.broadcast %151 : vector<8x1xf32> to vector<8x32xf32>
    %160 = arith.subf %147, %159 : vector<8x32xf32>
    %cst_50 = arith.constant 9.99999974E-6 : f32
    %161 = vector.broadcast %cst_50 : f32 to vector<8x1xf32>
    %162 = arith.addf %158, %161 : vector<8x1xf32>
    %163 = math.rsqrt %162 : vector<8x1xf32>
    %164 = vector.broadcast %163 : vector<8x1xf32> to vector<8x32xf32>
    %165 = arith.mulf %160, %164 : vector<8x32xf32>
    %166 = vector.broadcast %111 : vector<1x32xf32> to vector<8x32xf32>
    %167 = arith.mulf %165, %166 : vector<8x32xf32>
    %168 = vector.broadcast %112 : vector<1x32xf32> to vector<8x32xf32>
    %169 = arith.addf %167, %168 : vector<8x32xf32>
    %170 = arith.truncf %169 : vector<8x32xf32> to vector<8x32xbf16>
    %171 = vector.extract_strided_slice %105 {offsets = [0, 128], sizes = [32, 128], strides = [1, 1]} : vector<32x256xbf16> to vector<32x128xbf16>
    %cst_51 = arith.constant dense<0.000000e+00> : vector<8x128xf32>
    %172 = tpu.matmul %170, %171, %cst_51 {dimension_numbers = #tpu.dot_dimension_numbers<[1], [0], [0], [1], [0, 0, 1, 1], [], []>} : vector<8x32xbf16>, vector<32x128xbf16>, vector<8x128xf32> -> vector<8x128xf32>
    %173 = vector.broadcast %116 : vector<1x128xf32> to vector<8x128xf32>
    %174 = arith.addf %172, %173 : vector<8x128xf32>
    %cst_52 = arith.constant 0.000000e+00 : f32
    %175 = vector.broadcast %cst_52 : f32 to vector<8x128xf32>
    %176 = arith.maximumf %174, %175 : vector<8x128xf32>
    %177 = arith.truncf %176 : vector<8x128xf32> to vector<8x128xbf16>
    %cst_53 = arith.constant dense<0.000000e+00> : vector<8x32xf32>
    %178 = tpu.matmul %177, %107, %cst_53 {dimension_numbers = #tpu.dot_dimension_numbers<[1], [0], [0], [1], [0, 0, 1, 1], [], []>} : vector<8x128xbf16>, vector<128x32xbf16>, vector<8x32xf32> -> vector<8x32xf32>
    %179 = vector.broadcast %115 : vector<1x32xf32> to vector<8x32xf32>
    %180 = arith.addf %178, %179 : vector<8x32xf32>
    %181 = arith.addf %180, %169 : vector<8x32xf32>
    %cst_54 = arith.constant dense<0.000000e+00> : vector<8xf32>
    %182 = vector.multi_reduction <add>, %181, %cst_54 [1] : vector<8x32xf32> to vector<8xf32>
    %183 = vector.shape_cast %182 : vector<8xf32> to vector<8x1xf32>
    %cst_55 = arith.constant 3.200000e+01 : f32
    %184 = vector.broadcast %cst_55 : f32 to vector<8x1xf32>
    %185 = arith.divf %183, %184 : vector<8x1xf32>
    %186 = vector.broadcast %185 : vector<8x1xf32> to vector<8x32xf32>
    %187 = arith.subf %181, %186 : vector<8x32xf32>
    %188 = arith.mulf %187, %187 : vector<8x32xf32>
    %cst_56 = arith.constant dense<0.000000e+00> : vector<8xf32>
    %189 = vector.multi_reduction <add>, %188, %cst_56 [1] : vector<8x32xf32> to vector<8xf32>
    %190 = vector.shape_cast %189 : vector<8xf32> to vector<8x1xf32>
    %cst_57 = arith.constant 3.200000e+01 : f32
    %191 = vector.broadcast %cst_57 : f32 to vector<8x1xf32>
    %192 = arith.divf %190, %191 : vector<8x1xf32>
    %193 = vector.broadcast %185 : vector<8x1xf32> to vector<8x32xf32>
    %194 = arith.subf %181, %193 : vector<8x32xf32>
    %cst_58 = arith.constant 9.99999974E-6 : f32
    %195 = vector.broadcast %cst_58 : f32 to vector<8x1xf32>
    %196 = arith.addf %192, %195 : vector<8x1xf32>
    %197 = math.rsqrt %196 : vector<8x1xf32>
    %198 = vector.broadcast %197 : vector<8x1xf32> to vector<8x32xf32>
    %199 = arith.mulf %194, %198 : vector<8x32xf32>
    %200 = vector.broadcast %113 : vector<1x32xf32> to vector<8x32xf32>
    %201 = arith.mulf %199, %200 : vector<8x32xf32>
    %202 = vector.broadcast %114 : vector<1x32xf32> to vector<8x32xf32>
    %203 = arith.addf %201, %202 : vector<8x32xf32>
    %c2 = arith.constant 2 : index
    %c0_59 = arith.constant 0 : index
    %c0_60 = arith.constant 0 : index
    %204 = vector.load %arg2[%c2, %c0_59, %c0_60] : memref<3x32x256xbf16, #tpu.memory_space<vmem>>, vector<1x32x256xbf16>
    %205 = vector.shape_cast %204 : vector<1x32x256xbf16> to vector<32x256xbf16>
    %c2_61 = arith.constant 2 : index
    %c0_62 = arith.constant 0 : index
    %c0_63 = arith.constant 0 : index
    %206 = vector.load %arg3[%c2_61, %c0_62, %c0_63] : memref<3x128x32xbf16, #tpu.memory_space<vmem>>, vector<1x128x32xbf16>
    %207 = vector.shape_cast %206 : vector<1x128x32xbf16> to vector<128x32xbf16>
    %c2_64 = arith.constant 2 : index
    %c0_65 = arith.constant 0 : index
    %c0_66 = arith.constant 0 : index
    %208 = vector.load %arg4[%c2_64, %c0_65, %c0_66] : memref<3x8x128xf32, #tpu.memory_space<vmem>>, vector<1x8x128xf32>
    %209 = vector.shape_cast %208 : vector<1x8x128xf32> to vector<8x128xf32>
    %210 = vector.extract_strided_slice %209 {offsets = [0, 0], sizes = [1, 32], strides = [1, 1]} : vector<8x128xf32> to vector<1x32xf32>
    %211 = vector.extract_strided_slice %209 {offsets = [1, 0], sizes = [1, 32], strides = [1, 1]} : vector<8x128xf32> to vector<1x32xf32>
    %212 = vector.extract_strided_slice %209 {offsets = [2, 0], sizes = [1, 32], strides = [1, 1]} : vector<8x128xf32> to vector<1x32xf32>
    %213 = vector.extract_strided_slice %209 {offsets = [3, 0], sizes = [1, 32], strides = [1, 1]} : vector<8x128xf32> to vector<1x32xf32>
    %214 = vector.extract_strided_slice %209 {offsets = [4, 0], sizes = [1, 32], strides = [1, 1]} : vector<8x128xf32> to vector<1x32xf32>
    %215 = vector.extract_strided_slice %209 {offsets = [5, 0], sizes = [1, 32], strides = [1, 1]} : vector<8x128xf32> to vector<1x32xf32>
    %216 = vector.extract_strided_slice %209 {offsets = [6, 0], sizes = [1, 128], strides = [1, 1]} : vector<8x128xf32> to vector<1x128xf32>
    %217 = arith.truncf %203 : vector<8x32xf32> to vector<8x32xbf16>
    %218 = vector.extract_strided_slice %205 {offsets = [0, 0], sizes = [32, 96], strides = [1, 1]} : vector<32x256xbf16> to vector<32x96xbf16>
    %cst_67 = arith.constant dense<0.000000e+00> : vector<8x96xf32>
    %219 = tpu.matmul %217, %218, %cst_67 {dimension_numbers = #tpu.dot_dimension_numbers<[1], [0], [0], [1], [0, 0, 1, 1], [], []>} : vector<8x32xbf16>, vector<32x96xbf16>, vector<8x96xf32> -> vector<8x96xf32>
    %220 = vector.extract_strided_slice %219 {offsets = [0, 0], sizes = [8, 32], strides = [1, 1]} : vector<8x96xf32> to vector<8x32xf32>
    %221 = vector.extract_strided_slice %219 {offsets = [0, 32], sizes = [8, 32], strides = [1, 1]} : vector<8x96xf32> to vector<8x32xf32>
    %222 = vector.extract_strided_slice %219 {offsets = [0, 64], sizes = [8, 32], strides = [1, 1]} : vector<8x96xf32> to vector<8x32xf32>
    %223 = tpu.concatenate %221, %221, %221, %221 in 0 : vector<8x32xf32>, vector<8x32xf32>, vector<8x32xf32>, vector<8x32xf32> -> vector<32x32xf32>
    %224 = arith.mulf %223, %1 : vector<32x32xf32>
    %225 = arith.truncf %224 : vector<32x32xf32> to vector<32x32xbf16>
    %226 = tpu.concatenate %222, %222, %222, %222 in 0 : vector<8x32xf32>, vector<8x32xf32>, vector<8x32xf32>, vector<8x32xf32> -> vector<32x32xf32>
    %227 = arith.mulf %226, %1 : vector<32x32xf32>
    %228 = arith.truncf %227 : vector<32x32xf32> to vector<32x32xbf16>
    %229 = arith.truncf %220 : vector<8x32xf32> to vector<8x32xbf16>
    %cst_68 = arith.constant dense<0.000000e+00> : vector<8x32xf32>
    %230 = tpu.matmul %229, %225, %cst_68 {dimension_numbers = #tpu.dot_dimension_numbers<[1], [1], [0], [0], [0, 0, 1, 0], [], []>} : vector<8x32xbf16>, vector<32x32xbf16>, vector<8x32xf32> -> vector<8x32xf32>
    %231 = arith.addf %230, %2 : vector<8x32xf32>
    %cst_69 = arith.constant dense<0xFF800000> : vector<8xf32>
    %232 = vector.multi_reduction <maximumf>, %231, %cst_69 [1] : vector<8x32xf32> to vector<8xf32>
    %233 = vector.shape_cast %232 : vector<8xf32> to vector<8x1xf32>
    %234 = vector.broadcast %233 : vector<8x1xf32> to vector<8x32xf32>
    %235 = arith.subf %231, %234 : vector<8x32xf32>
    %236 = math.exp %235 : vector<8x32xf32>
    %237 = arith.truncf %236 : vector<8x32xf32> to vector<8x32xbf16>
    %cst_70 = arith.constant dense<0.000000e+00> : vector<8x32xf32>
    %238 = tpu.matmul %237, %3, %cst_70 {dimension_numbers = #tpu.dot_dimension_numbers<[1], [0], [0], [1], [0, 0, 1, 1], [], []>} : vector<8x32xbf16>, vector<32x32xbf16>, vector<8x32xf32> -> vector<8x32xf32>
    %cst_71 = arith.constant dense<0.000000e+00> : vector<8x32xf32>
    %239 = tpu.matmul %237, %228, %cst_71 {dimension_numbers = #tpu.dot_dimension_numbers<[1], [0], [0], [1], [0, 0, 1, 1], [], []>} : vector<8x32xbf16>, vector<32x32xbf16>, vector<8x32xf32> -> vector<8x32xf32>
    %240 = tpu.reciprocal %238 : vector<8x32xf32> -> vector<8x32xf32>
    %241 = arith.mulf %239, %240 : vector<8x32xf32>
    %242 = arith.truncf %241 : vector<8x32xf32> to vector<8x32xbf16>
    %243 = vector.extract_strided_slice %205 {offsets = [0, 96], sizes = [32, 32], strides = [1, 1]} : vector<32x256xbf16> to vector<32x32xbf16>
    %cst_72 = arith.constant dense<0.000000e+00> : vector<8x32xf32>
    %244 = tpu.matmul %242, %243, %cst_72 {dimension_numbers = #tpu.dot_dimension_numbers<[1], [0], [0], [1], [0, 0, 1, 1], [], []>} : vector<8x32xbf16>, vector<32x32xbf16>, vector<8x32xf32> -> vector<8x32xf32>
    %245 = vector.broadcast %210 : vector<1x32xf32> to vector<8x32xf32>
    %246 = arith.addf %244, %245 : vector<8x32xf32>
    %247 = arith.addf %246, %203 : vector<8x32xf32>
    %cst_73 = arith.constant dense<0.000000e+00> : vector<8xf32>
    %248 = vector.multi_reduction <add>, %247, %cst_73 [1] : vector<8x32xf32> to vector<8xf32>
    %249 = vector.shape_cast %248 : vector<8xf32> to vector<8x1xf32>
    %cst_74 = arith.constant 3.200000e+01 : f32
    %250 = vector.broadcast %cst_74 : f32 to vector<8x1xf32>
    %251 = arith.divf %249, %250 : vector<8x1xf32>
    %252 = vector.broadcast %251 : vector<8x1xf32> to vector<8x32xf32>
    %253 = arith.subf %247, %252 : vector<8x32xf32>
    %254 = arith.mulf %253, %253 : vector<8x32xf32>
    %cst_75 = arith.constant dense<0.000000e+00> : vector<8xf32>
    %255 = vector.multi_reduction <add>, %254, %cst_75 [1] : vector<8x32xf32> to vector<8xf32>
    %256 = vector.shape_cast %255 : vector<8xf32> to vector<8x1xf32>
    %cst_76 = arith.constant 3.200000e+01 : f32
    %257 = vector.broadcast %cst_76 : f32 to vector<8x1xf32>
    %258 = arith.divf %256, %257 : vector<8x1xf32>
    %259 = vector.broadcast %251 : vector<8x1xf32> to vector<8x32xf32>
    %260 = arith.subf %247, %259 : vector<8x32xf32>
    %cst_77 = arith.constant 9.99999974E-6 : f32
    %261 = vector.broadcast %cst_77 : f32 to vector<8x1xf32>
    %262 = arith.addf %258, %261 : vector<8x1xf32>
    %263 = math.rsqrt %262 : vector<8x1xf32>
    %264 = vector.broadcast %263 : vector<8x1xf32> to vector<8x32xf32>
    %265 = arith.mulf %260, %264 : vector<8x32xf32>
    %266 = vector.broadcast %211 : vector<1x32xf32> to vector<8x32xf32>
    %267 = arith.mulf %265, %266 : vector<8x32xf32>
    %268 = vector.broadcast %212 : vector<1x32xf32> to vector<8x32xf32>
    %269 = arith.addf %267, %268 : vector<8x32xf32>
    %270 = arith.truncf %269 : vector<8x32xf32> to vector<8x32xbf16>
    %271 = vector.extract_strided_slice %205 {offsets = [0, 128], sizes = [32, 128], strides = [1, 1]} : vector<32x256xbf16> to vector<32x128xbf16>
    %cst_78 = arith.constant dense<0.000000e+00> : vector<8x128xf32>
    %272 = tpu.matmul %270, %271, %cst_78 {dimension_numbers = #tpu.dot_dimension_numbers<[1], [0], [0], [1], [0, 0, 1, 1], [], []>} : vector<8x32xbf16>, vector<32x128xbf16>, vector<8x128xf32> -> vector<8x128xf32>
    %273 = vector.broadcast %216 : vector<1x128xf32> to vector<8x128xf32>
    %274 = arith.addf %272, %273 : vector<8x128xf32>
    %cst_79 = arith.constant 0.000000e+00 : f32
    %275 = vector.broadcast %cst_79 : f32 to vector<8x128xf32>
    %276 = arith.maximumf %274, %275 : vector<8x128xf32>
    %277 = arith.truncf %276 : vector<8x128xf32> to vector<8x128xbf16>
    %cst_80 = arith.constant dense<0.000000e+00> : vector<8x32xf32>
    %278 = tpu.matmul %277, %207, %cst_80 {dimension_numbers = #tpu.dot_dimension_numbers<[1], [0], [0], [1], [0, 0, 1, 1], [], []>} : vector<8x128xbf16>, vector<128x32xbf16>, vector<8x32xf32> -> vector<8x32xf32>
    %279 = vector.broadcast %215 : vector<1x32xf32> to vector<8x32xf32>
    %280 = arith.addf %278, %279 : vector<8x32xf32>
    %281 = arith.addf %280, %269 : vector<8x32xf32>
    %cst_81 = arith.constant dense<0.000000e+00> : vector<8xf32>
    %282 = vector.multi_reduction <add>, %281, %cst_81 [1] : vector<8x32xf32> to vector<8xf32>
    %283 = vector.shape_cast %282 : vector<8xf32> to vector<8x1xf32>
    %cst_82 = arith.constant 3.200000e+01 : f32
    %284 = vector.broadcast %cst_82 : f32 to vector<8x1xf32>
    %285 = arith.divf %283, %284 : vector<8x1xf32>
    %286 = vector.broadcast %285 : vector<8x1xf32> to vector<8x32xf32>
    %287 = arith.subf %281, %286 : vector<8x32xf32>
    %288 = arith.mulf %287, %287 : vector<8x32xf32>
    %cst_83 = arith.constant dense<0.000000e+00> : vector<8xf32>
    %289 = vector.multi_reduction <add>, %288, %cst_83 [1] : vector<8x32xf32> to vector<8xf32>
    %290 = vector.shape_cast %289 : vector<8xf32> to vector<8x1xf32>
    %cst_84 = arith.constant 3.200000e+01 : f32
    %291 = vector.broadcast %cst_84 : f32 to vector<8x1xf32>
    %292 = arith.divf %290, %291 : vector<8x1xf32>
    %293 = vector.broadcast %285 : vector<8x1xf32> to vector<8x32xf32>
    %294 = arith.subf %281, %293 : vector<8x32xf32>
    %cst_85 = arith.constant 9.99999974E-6 : f32
    %295 = vector.broadcast %cst_85 : f32 to vector<8x1xf32>
    %296 = arith.addf %292, %295 : vector<8x1xf32>
    %297 = math.rsqrt %296 : vector<8x1xf32>
    %298 = vector.broadcast %297 : vector<8x1xf32> to vector<8x32xf32>
    %299 = arith.mulf %294, %298 : vector<8x32xf32>
    %300 = vector.broadcast %213 : vector<1x32xf32> to vector<8x32xf32>
    %301 = arith.mulf %299, %300 : vector<8x32xf32>
    %302 = vector.broadcast %214 : vector<1x32xf32> to vector<8x32xf32>
    %303 = arith.addf %301, %302 : vector<8x32xf32>
    %c0_86 = arith.constant 0 : index
    %c0_87 = arith.constant 0 : index
    %304 = vector.load %arg7[%c0_86, %c0_87] : memref<8x32xf32, #tpu.memory_space<vmem>>, vector<8x32xf32>
    tpu.vector_store %arg7[%c0_86, %c0_87], %303 {strides = array<i32>} : memref<8x32xf32, #tpu.memory_space<vmem>>, vector<8x32xf32>,
    return
  }
  func.func @transform_0(%arg0: i32) -> (i32, i32) {
    %c0_i32 = arith.constant 0 : i32
    %c0_i32_0 = arith.constant 0 : i32
    return %arg0, %c0_i32 : i32, i32
  }
  func.func @transform_1(%arg0: i32) -> (i32, i32, i32) {
    %c0_i32 = arith.constant 0 : i32
    %c0_i32_0 = arith.constant 0 : i32
    %c0_i32_1 = arith.constant 0 : i32
    %c0_i32_2 = arith.constant 0 : i32
    return %c0_i32, %c0_i32_0, %c0_i32_1 : i32, i32, i32
  }
  func.func @transform_2(%arg0: i32) -> (i32, i32, i32) {
    %c0_i32 = arith.constant 0 : i32
    %c0_i32_0 = arith.constant 0 : i32
    %c0_i32_1 = arith.constant 0 : i32
    %c0_i32_2 = arith.constant 0 : i32
    return %c0_i32, %c0_i32_0, %c0_i32_1 : i32, i32, i32
  }
  func.func @transform_3(%arg0: i32) -> (i32, i32, i32) {
    %c0_i32 = arith.constant 0 : i32
    %c0_i32_0 = arith.constant 0 : i32
    %c0_i32_1 = arith.constant 0 : i32
    %c0_i32_2 = arith.constant 0 : i32
    return %c0_i32, %c0_i32_0, %c0_i32_1 : i32, i32, i32
  }
  func.func @transform_4(%arg0: i32) -> (i32, i32) {
    %c0_i32 = arith.constant 0 : i32
    %c0_i32_0 = arith.constant 0 : i32
    %c0_i32_1 = arith.constant 0 : i32
    return %c0_i32, %c0_i32_0 : i32, i32
  }
  func.func @transform_5(%arg0: i32) -> (i32, i32) {
    %c0_i32 = arith.constant 0 : i32
    %c0_i32_0 = arith.constant 0 : i32
    %c0_i32_1 = arith.constant 0 : i32
    return %c0_i32, %c0_i32_0 : i32, i32
  }
  func.func @transform_6(%arg0: i32) -> (i32, i32) {
    %c0_i32 = arith.constant 0 : i32
    %c0_i32_0 = arith.constant 0 : i32
    return %arg0, %c0_i32 : i32, i32
  }
}

</mosaic_0001>

<bundles_post_ra>
// kernel: sttre_forward.1
= control target key start
LH: loop header
LB: loop body
LE: loop exit
PB: predicated region body
PF: predicated region fallthrough
CT: control target
= control target key end

     0   :  { %s1640_s21 = smov 0   ;;  %s2019_s0 = inlined_call_operand.vmem [shape: f32[16,32], index: 0, kind: input, shape index: {}]   ;;  %s2020_s1 = inlined_call_operand.vmem [shape: bf16[3,32,256], index: 1, kind: input, shape index: {}]   ;;  %s2021_s2 = inlined_call_operand.vmem [shape: bf16[3,128,32], index: 2, kind: input, shape index: {}]   ;;  %s2022_s3 = inlined_call_operand.vmem [shape: f32[3,8,128], index: 3, kind: input, shape index: {}]   ;;  %s2023_s4 = inlined_call_operand.vmem [shape: f32[32,32], index: 4, kind: input, shape index: {}]   ;;  %s2024_s5 = inlined_call_operand.vmem [shape: f32[8,32], index: 5, kind: input, shape index: {}]   ;;  %s2025_s6 = inlined_call_operand.vmem [shape: f32[16,32], index: 6, kind: output, shape index: {}]  }
   0x1 LB: > { %s1306_s22 = sadd.s32 4294967295, %s1599_s21   ;;  %p1310_p0 = scmp.ge.s32.totalorder %s1599_s21, 1  ;;  %s1599_s21 = sphi %s1640_s21, %s16_s21  }
   0x2   : > { %p211_p1 = scmp.lt.s32.totalorder %s1599_s21, 3 }
   0x4   : > { %p212_p2 = pnand %p1310_p0, %p211_p1 }
   0x5   : > { %s1601_s29 = smov (!%p212_p2), 32   ;;  %p239_p3 = scmp.lt.s32.totalorder (!%p212_p2), %s1306_s22, 1 }
   0x6   : > { %215 = sbr.rel (%p212_p2) target bundleno = 4837 (0x12e5), region = 44  ;;  %s1602_s20 = smov (!%p212_p2), 64  }
   0x7   : > { %s1603_s23 = smov (!%p212_p2), 96  }
   0xb   : > { %v1651_v0 = vld [vmem:[%s2023_s4 + $0x10] sm:$0xff]  ;;  %v1522_v2 = vld [vmem:[%s2020_s1 + $0x14] sm:$0xf0]  ;;  %v1664_v4 = vld [vmem:[%s2023_s4] sm:$0xff]  ;;  %s2027_s22 = smov (!%p239_p3, %s1306_s22), 1  ;;  %vm290_vm0 = vcmask 261120  }
   0xc   : > { %v1319_v1 = vld [vmem:[%s2020_s1 + $0x10] sm:$0xf]  ;;  %315 = vrot.lane.b32.xlu0 %v1651_v0, %s1601_s29  ;;  %v1315_v5 = vld [vmem:[%s2020_s1] sm:$0xf]  ;;  %v1520_v6 = vld [vmem:[%s2020_s1 + $0x4] sm:$0xf0] }
   0xd   : > { %v1320_v3 = vor.u32 %v1522_v2, %v1319_v1  ;;  %311 = vrot.lane.b32.xlu1 %v1664_v4, %s1601_s29  ;;  %v1316_v7 = vor.u32 %v1520_v6, %v1315_v5  ;;  %s1311_s12 = sshll.u32 %s2027_s22, 3  ;;  %v252_v8 = vld [vmem:[%s2023_s4 + $0x18] sm:$0xff]  ;;  %v250_v10 = vld [vmem:[%s2023_s4 + $0x8] sm:$0xff]  ;;  %v1737_v41 = vld [vmem:[%s2024_s5] sm:$0xff] }
   0xe   : > { %s242_s17 = scalar_lea.vmem %s2019_s0, %s1311_s12  ;;  %v1742_v46 = vpack.c.bf16 %v252_v8, %v1651_v0  ;;  %v1746_v47 = vpack.c.bf16 %v250_v10, %v1664_v4  ;;  %s246_s26 = scalar_lea.vmem %s2025_s6, %s1311_s12 }
   0xf   : > { %300 = vmatpush.bf16.msra.mxu0 %v1320_v3  ;;  %v1685_v9 = vld [vmem:[%s242_s17] sm:$0xff] }
  0x10   : > { %v277_v11 = vpack.c.bf16 %v1685_v9, %v1685_v9  ;;  %392 = vmatpush.bf16.msra.mxu2 %v1742_v46 }
  0x13   : > { %301 = vmatpush.bf16.msra.mxu0 %v1316_v7 }
  0x14   : > { %317 = vrot.lane.b32.xlu0 %v252_v8, %s1601_s29  ;;  %393 = vmatpush.bf16.msra.mxu2 %v1746_v47 }
  0x15   : > { %313 = vrot.lane.b32.xlu1 %v250_v10, %s1601_s29 }
  0x16   : > { %1321 = vmatmul.msk.bf16.vlgmr.msra.gmra.mxu0 %vm290_vm0, %v277_v11 }
  0x1c   : > { %333 = vrot.lane.b32.xlu0 %v1651_v0, %s1602_s20 }
  0x1d   : > { %335 = vrot.lane.b32.xlu1 %v252_v8, %s1602_s20 }
  0x24   : > { %331 = vrot.lane.b32.xlu0 %v250_v10, %s1602_s20 }
  0x7e   : > { %v1699_v12 = vpop.permute.xlu0 %315 }
  0x7f   : > { %v1701_v13 = vpop.permute.xlu1 %311 }
  0x86   : > { %v1703_v14 = vpop.permute.xlu0 %317 }
  0x87   : > { %v1708_v19 = vpop.permute.xlu1 %313 }
  0x8e   : > { %v1717_v25 = vpop.permute.xlu0 %333 }
  0x8f   : > { %v1713_v24 = vpop.permute.xlu1 %335 }
  0x93   : > { %v303_v15 = vpop.f32.mrf.mxu0 }
  0x94   : > { %v325_v16 = vmul.f32 %v1699_v12, %v303_v15  ;;  %v326_v17 = vmul.f32 %v1703_v14, %v303_v15  ;;  %v323_v20 = vmul.f32 %v1701_v13, %v303_v15  ;;  %v324_v21 = vmul.f32 %v1708_v19, %v303_v15 }
  0x95   : > { %v343_v26 = vmul.f32 %v1717_v25, %v303_v15  ;;  %v344_v27 = vmul.f32 %v1713_v24, %v303_v15  ;;  %v347_v34 = vpack.c.bf16 %v303_v15, %v303_v15 }
  0x96   : > { %v328_v18 = vpack.c.bf16 %v326_v17, %v325_v16  ;;  %v327_v23 = vpack.c.bf16 %v324_v21, %v323_v20  ;;  %v1725_v33 = vpop.permute.xlu0 %331 }
  0x97   : > { %v346_v28 = vpack.c.bf16 %v344_v27, %v343_v26  ;;  %v342_v36 = vmul.f32 %v1725_v33, %v303_v15 }
  0x98   : > { %352 = vrot.lane.b32.xlu2 %v328_v18, %s1603_s23  ;;  %v1604_v18 = vmov 32.0  }
  0x9b   : > { %v305_v22 = vpop.f32.mrf.mxu0 }
  0xa0   : > { %350 = vrot.lane.b32.xlu2 %v327_v23, %s1603_s23 }
  0xa8   : > { %329 = vrot.lane.b32.xlu2 %v1664_v4, %s1602_s20 }
  0xb0   : > { %403 = vrot.lane.b32.xlu2 %v346_v28, %s1602_s20 }
  0xb8   : > { %439 = vrot.lane.b32.xlu2 %v1320_v3, %s1601_s29 }
  0xf2   : > { %v353_v29 = vpop.permute.xlu2 %352 }
  0xf3   : > { %v361_v30 = vsel %vm290_vm0, %v353_v29, 0 }
  0xf4   : > { %369 = vmatpush.bf16.xpose.msra.mxu1 %v361_v30 }
  0xfa   : > { %v351_v31 = vpop.permute.xlu2 %350 }
  0xfb   : > { %v358_v32 = vsel %vm290_vm0, %v351_v31, 0 }
  0xfc   : > { %370 = vmatpush.bf16.xpose.msra.mxu1 %v358_v32  ;;  %v1521_v32 = vld [vmem:[%s2020_s1 + $0x14] sm:$0xf] }
 0x102   : > { %v1727_v35 = vpop.permute.xlu2 %329 }
 0x103   : > { %v341_v37 = vmul.f32 %v1727_v35, %v303_v15  ;;  %1322 = vmatmul.msk.bf16.vlgmr.msra.gmra.mxu1 %vm290_vm0, %v347_v34  ;;  %v1330_v34 = vld [vmem:[%s2020_s1 + $0x18] sm:$0xf0] }
 0x105   : > { %v345_v38 = vpack.c.bf16 %v342_v36, %v341_v37  ;;  %v1333_v36 = vor.u32 %v1521_v32, %v1330_v34  ;;  %v1519_v37 = vld [vmem:[%s2020_s1 + $0x4] sm:$0xf]  ;;  %v1532_v32 = vld [vmem:[%s2020_s1 + $0x24] sm:$0xf0] }
 0x107   : > { %401 = vrot.lane.b32.xlu0 %v345_v38, %s1602_s20  ;;  %v1326_v38 = vld [vmem:[%s2020_s1 + $0x8] sm:$0xf0]  ;;  %512 = vmatpush.bf16.msrb.mxu2 %v1333_v36 }
 0x10a   : > { %v404_v39 = vpop.permute.xlu2 %403 }
 0x10b   : > { %413 = vmatpush.bf16.msrb.mxu1 %v404_v39  ;;  %v1329_v39 = vor.u32 %v1519_v37, %v1326_v38 }
 0x10d   : > { %513 = vmatpush.bf16.msrb.mxu2 %v1329_v39 }
 0x10f   : > { %437 = vrot.lane.b32.xlu0 %v1316_v7, %s1601_s29  ;;  %v1755_v7 = vld [vmem:[%s2022_s3] sm:$0xff] }
 0x110   : > { %v436_v8 = vperm.slane %v1755_v7, 0 }
 0x112   : > { %v440_v53 = vpop.permute.xlu2 %439 }
 0x113   : > { %452 = vmatpush.bf16.msrb.mxu0 %v440_v53 }
 0x179   : > { %v402_v40 = vpop.permute.xlu0 %401 }
 0x17a   : > { %414 = vmatpush.bf16.msrb.mxu1 %v402_v40  ;;  %v1530_v40 = vld [vmem:[%s2021_s2 + $0x38] sm:$0xff] }
 0x17b   : > { %570 = vmatpush.bf16.msra.mxu3 %v1530_v40 }
 0x180   : > { %v372_v42 = vpop.f32.mrf.mxu1 }
 0x181   : > { %v373_v43 = vadd.f32 %v372_v42, %v1737_v41  ;;  %v438_v54 = vpop.permute.xlu0 %437 }
 0x182   : > { %453 = vmatpush.bf16.msrb.mxu0 %v438_v54 }
 0x183   : > { %v376_v44 = vsel %vm290_vm0, %v373_v43, -inf }
 0x184   : > { %377 = vmax.xlane.f32.xlu1 %v376_v44  ;;  %v1529_v44 = vld [vmem:[%s2021_s2 + $0x30] sm:$0xff] }
 0x185   : > { %571 = vmatpush.bf16.msra.mxu3 %v1529_v44 }
 0x188   : > { %v374_v45 = vpop.f32.mrf.mxu1 }
 0x1f7   : > { %v378_v48 = vpop.xlane.xlu1 %377 }
 0x1f8   : > { %v379_v49 = vsub.f32 %v373_v43, %v378_v48  ;;  %v1528_v48 = vld [vmem:[%s2021_s2 + $0x28] sm:$0xff] }
 0x1f9   : > { %572 = vmatpush.bf16.msra.mxu3 %v1528_v48  ;;  %v606_v48 = vperm.slane %v1755_v7, 3 }
 0x1fa   : > { %v380_v50 = vmul.f32 1.442695, %v379_v49  ;;  %v1527_v49 = vld [vmem:[%s2021_s2 + $0x20] sm:$0xff] }
 0x1fc   : > { %1567 = vpow2.f32 %v380_v50 }
 0x1fd   : > { %573 = vmatpush.bf16.msra.mxu3 %v1527_v49 }
 0x202   : > { %v1568_v51 = vpop.eup %1567 }
 0x203   : > { %v382_v52 = vpack.c.bf16 %v1568_v51, %v1568_v51 }
 0x205   : > { %1323 = vmatmul.msk.bf16.vlgmr.msra.gmra.mxu2 %vm290_vm0, %v382_v52  ;;  %1324 = vmatmul.msk.bf16.vlgmr.msrb.gmra.mxu1 %vm290_vm0, %v382_v52  ;;  %v1526_v52 = vld [vmem:[%s2021_s2 + $0x18] sm:$0xff] }
 0x206   : > { %720 = vmatpush.bf16.msra.mxu2 %v1742_v46  ;;  %574 = vmatpush.bf16.msra.mxu3 %v1526_v52 }
 0x20a   : > { %721 = vmatpush.bf16.msra.mxu2 %v1746_v47 }
 0x282   : > { %v416_v55 = vpop.f32.mrf.mxu1 }
 0x288   : > { %v395_v56 = vpop.f32.mrf.mxu2 }
 0x289   : > { %1569 = vrcp.f32 %v395_v56  ;;  %v431_v62 = vand.u32 2147483648, %v395_v56  ;;  %v429_v0 = vand.u32 2147483647, %v395_v56  ;;  %vm425_vm2 = vweird.f32 %v395_v56 }
 0x28a   : > { %v418_v57 = vpop.f32.mrf.mxu1  ;;  %1571 = vrcp.f32 %v1604_v18 }
 0x28b   : > { %v432_v2 = vor.u32 1.1754944e-38, %v431_v62  ;;  %vm430_vm4 = vcmp.eq.f32.partialorder %v429_v0, 8.507059e+37 }
 0x28f   : > { %v1570_v58 = vpop.eup %1569 }
 0x290   : > { %v421_v59 = vmul.f32 %v1570_v58, %v395_v56  ;;  %v397_v60 = vpop.f32.mrf.mxu2  ;;  %vm426_vm1 = vweird.f32 %v1570_v58  ;;  %v1572_v20 = vpop.eup %1571 }
 0x291   : > { %vm427_vm3 = vmor %vm425_vm2, %vm426_vm1  ;;  %v464_v21 = vmul.f32 32.0, %v1572_v20  ;;  %vm468_vm5 = vweird.f32 %v1572_v20 }
 0x292   : > { %v422_v61 = vsub.f32 1.0, %v421_v59 }
 0x293   : > { %v465_v22 = vsub.f32 1.0, %v464_v21 }
 0x294   : > { %v423_v63 = vmul.f32 %v1570_v58, %v422_v61  ;;  %v491_v61 = vperm.slane %v1755_v7, 2 }
 0x295   : > { %v466_v23 = vmul.f32 %v1572_v20, %v465_v22 }
 0x296   : > { %v424_v1 = vadd.f32 %v1570_v58, %v423_v63 }
 0x297   : > { %v467_v26 = vadd.f32 %v1572_v20, %v466_v23 }
 0x298   : > { %v428_v3 = vsel %vm427_vm3, %v1570_v58, %v424_v1  ;;  %v489_v58 = vperm.slane %v1755_v7, 1  ;;  %v1524_v1 = vld [vmem:[%s2021_s2 + $0x8] sm:$0xff] }
 0x299   : > { %v433_v4 = vsel %vm430_vm4, %v432_v2, %v428_v3  ;;  %v1760_v27 = vsel %vm468_vm5, %v1572_v20, %v467_v26  ;;  %v1523_v2 = vld [vmem:[%s2021_s2] sm:$0xff]  ;;  %v494_v3 = vperm.slane %v1755_v7, 6 }
 0x29a   : > { %v434_v5 = vmul.f32 %v433_v4, %v416_v55  ;;  %v1525_v55 = vld [vmem:[%s2021_s2 + $0x10] sm:$0xff] }
 0x29b   : > { %575 = vmatpush.bf16.msra.mxu3 %v1525_v55 }
 0x29c   : > { %v435_v6 = vpack.c.bf16 %v434_v5, %v434_v5 }
 0x29e   : > { %1325 = vmatmul.msk.bf16.vlgmr.msrb.gmra.mxu0 %vm290_vm0, %v435_v6 }
 0x29f   : > { %576 = vmatpush.bf16.msra.mxu3 %v1524_v1 }
 0x2a3   : > { %577 = vmatpush.bf16.msra.mxu3 %v1523_v2 }
 0x31b   : > { %v455_v10 = vpop.f32.mrf.mxu0 }
 0x31c   : > { %v456_v11 = vadd.f32 %v455_v10, %v436_v8 }
 0x31e   : > { %v459_v15 = vadd.f32 %v456_v11, %v1685_v9  ;;  %v521_v11 = vperm.slane %v1755_v7, 5 }
 0x320   : > { %v460_v16 = vsel %vm290_vm0, %v459_v15, 0.0 }
 0x321   : > { %461 = vadd.xlane.f32.xlu2 %v460_v16 }
 0x323   : > { %v457_v17 = vpop.f32.mrf.mxu0 }
 0x394   : > { %v462_v28 = vpop.xlane.xlu2 %461 }
 0x395   : > { %v470_v29 = vmul.f32 %v1760_v27, %v462_v28 }
 0x397   : > { %v471_v30 = vsub.f32 %v459_v15, %v470_v29  ;;  %v1394_v29 = vld [vmem:[%s2020_s1 + $0x30] sm:$0xf] }
 0x399   : > { %v472_v31 = vmul.f32 %v471_v30, %v471_v30 }
 0x39b   : > { %v473_v9 = vsel %vm290_vm0, %v472_v31, 0.0 }
 0x39c   : > { %474 = vadd.xlane.f32.xlu0 %v473_v9  ;;  %v1390_v9 = vld [vmem:[%s2020_s1 + $0x20] sm:$0xf] }
 0x39d   : > { %v1391_v34 = vor.u32 %v1532_v32, %v1390_v9 }
 0x40f   : > { %v475_v42 = vpop.xlane.xlu0 %474 }
 0x410   : > { %v476_v43 = vmul.f32 %v475_v42, %v1760_v27 }
 0x412   : > { %v477_v45 = vadd.f32 1e-05, %v476_v43 }
 0x414   : > { %1573 = vrsqrt.f32 %v477_v45  ;;  %vm484_vm7 = vweird.f32 %v477_v45 }
 0x41a   : > { %v1574_v50 = vpop.eup %1573 }
 0x41b   : > { %v479_v51 = vmul.f32 %v1574_v50, %v477_v45  ;;  %vm485_vm6 = vweird.f32 %v1574_v50 }
 0x41c   : > { %vm486_vm8 = vmor %vm484_vm7, %vm485_vm6 }
 0x41d   : > { %v480_v53 = vmul.f32 %v1574_v50, %v479_v51 }
 0x41f   : > { %v481_v54 = vmul.f32 0.5, %v480_v53 }
 0x421   : > { %v482_v56 = vsub.f32 1.5, %v481_v54 }
 0x423   : > { %v483_v57 = vmul.f32 %v1574_v50, %v482_v56 }
 0x425   : > { %v487_v59 = vsel %vm486_vm8, %v1574_v50, %v483_v57  ;;  %v608_v50 = vperm.slane %v1755_v7, 4 }
 0x426   : > { %v488_v60 = vmul.f32 %v487_v59, %v471_v30  ;;  %v1534_v30 = vld [vmem:[%s2020_s1 + $0x34] sm:$0xf0] }
 0x427   : > { %v1395_v31 = vor.u32 %v1534_v30, %v1394_v29 }
 0x428   : > { %v490_v62 = vmul.f32 %v489_v58, %v488_v60 }
 0x429   : > { %656 = vmatpush.bf16.msra.mxu1 %v1395_v31 }
 0x42a   : > { %v492_v63 = vadd.f32 %v491_v61, %v490_v62 }
 0x42c   : > { %v493_v0 = vpack.c.bf16 %v492_v63, %v492_v63 }
 0x42d   : > { %657 = vmatpush.bf16.msra.mxu1 %v1391_v34 }
 0x42e   : > { %1334 = vmatmul.msk.bf16.vlgmr.msrb.gmra.mxu2 %vm290_vm0, %v493_v0 }
 0x4b1   : > { %v515_v4 = vpop.f32.mrf.mxu2 }
 0x4b2   : > { %v516_v5 = vadd.f32 %v515_v4, %v494_v3 }
 0x4b4   : > { %v519_v6 = vmax.f32 %v516_v5, 0.0 }
 0x4b6   : > { %v520_v8 = vpack.c.bf16 %v519_v6, %v519_v6 }
 0x4b8   : > { %578 = vmatmul.bf16.vlgmr.msra.gmra.mxu3 %v520_v8 }
 0x4b9   : > { %v517_v10 = vpop.f32.mrf.mxu2 }
 0x53b   : > { %v579_v15 = vpop.f32.mrf.mxu3 }
 0x53c   : > { %v580_v16 = vadd.f32 %v579_v15, %v521_v11 }
 0x53e   : > { %v583_v17 = vadd.f32 %v580_v16, %v492_v63 }
 0x540   : > { %v584_v18 = vsel %vm290_vm0, %v583_v17, 0.0 }
 0x541   : > { %585 = vadd.xlane.f32.xlu1 %v584_v18 }
 0x543   : > { %v581_v20 = vpop.f32.mrf.mxu3 }
 0x5b4   : > { %v586_v21 = vpop.xlane.xlu1 %585 }
 0x5b5   : > { %v587_v22 = vmul.f32 %v586_v21, %v1760_v27 }
 0x5b7   : > { %v588_v23 = vsub.f32 %v583_v17, %v587_v22 }
 0x5b9   : > { %v589_v26 = vmul.f32 %v588_v23, %v588_v23 }
 0x5bb   : > { %v590_v28 = vsel %vm290_vm0, %v589_v26, 0.0 }
 0x5bc   : > { %591 = vadd.xlane.f32.xlu1 %v590_v28 }
 0x62f   : > { %v592_v36 = vpop.xlane.xlu1 %591 }
 0x630   : > { %v593_v37 = vmul.f32 %v592_v36, %v1760_v27 }
 0x632   : > { %v594_v38 = vadd.f32 1e-05, %v593_v37 }
 0x634   : > { %1575 = vrsqrt.f32 %v594_v38  ;;  %vm601_vm10 = vweird.f32 %v594_v38 }
 0x63a   : > { %v1576_v39 = vpop.eup %1575 }
 0x63b   : > { %v596_v40 = vmul.f32 %v1576_v39, %v594_v38  ;;  %vm602_vm9 = vweird.f32 %v1576_v39 }
 0x63c   : > { %vm603_vm11 = vmor %vm601_vm10, %vm602_vm9 }
 0x63d   : > { %v597_v42 = vmul.f32 %v1576_v39, %v596_v40 }
 0x63f   : > { %v598_v43 = vmul.f32 0.5, %v597_v42 }
 0x641   : > { %v599_v44 = vsub.f32 1.5, %v598_v43 }
 0x643   : > { %v600_v45 = vmul.f32 %v1576_v39, %v599_v44 }
 0x645   : > { %v604_v49 = vsel %vm603_vm11, %v1576_v39, %v600_v45 }
 0x646   : > { %v605_v51 = vmul.f32 %v604_v49, %v588_v23 }
 0x648   : > { %v607_v52 = vmul.f32 %v606_v48, %v605_v51  ;;  %v1856_v51 = vld [vmem:[%s2022_s3 + $0x8] sm:$0xff] }
 0x64a   : > { %v1826_v53 = vadd.f32 %v608_v50, %v607_v52  ;;  %v764_v52 = vperm.slane %v1856_v51, 0 }
 0x64c   : > { %v634_v54 = vpack.c.bf16 %v1826_v53, %v1826_v53 }
 0x64e   : > { %1396 = vmatmul.msk.bf16.vlgmr.msra.gmra.mxu1 %vm290_vm0, %v634_v54 }
 0x6cb   : > { %v659_v55 = vpop.f32.mrf.mxu1 }
 0x6cc   : > { %v665_v56 = vmul.f32 %v659_v55, %v1699_v12  ;;  %v666_v57 = vmul.f32 %v659_v55, %v1703_v14  ;;  %v663_v58 = vmul.f32 %v659_v55, %v1701_v13  ;;  %v664_v59 = vmul.f32 %v659_v55, %v1708_v19 }
 0x6cd   : > { %v669_v61 = vmul.f32 %v659_v55, %v1727_v35  ;;  %v670_v62 = vmul.f32 %v659_v55, %v1725_v33  ;;  %v675_v5 = vpack.c.bf16 %v659_v55, %v659_v55  ;;  %v671_v15 = vmul.f32 %v659_v55, %v1717_v25 }
 0x6ce   : > { %v668_v60 = vpack.c.bf16 %v666_v57, %v665_v56  ;;  %v667_v7 = vpack.c.bf16 %v664_v59, %v663_v58  ;;  %v672_v16 = vmul.f32 %v659_v55, %v1713_v24 }
 0x6cf   : > { %v673_v0 = vpack.c.bf16 %v670_v62, %v669_v61 }
 0x6d0   : > { %680 = vrot.lane.b32.xlu2 %v668_v60, %s1603_s23  ;;  %678 = vrot.lane.b32.xlu1 %v667_v7, %s1603_s23  ;;  %v674_v17 = vpack.c.bf16 %v672_v16, %v671_v15 }
 0x6d3   : > { %v661_v63 = vpop.f32.mrf.mxu1 }
 0x6d4   : > { %v1533_v63 = vld [vmem:[%s2020_s1 + $0x34] sm:$0xf] }
 0x6d8   : > { %729 = vrot.lane.b32.xlu2 %v673_v0, %s1602_s20  ;;  %767 = vrot.lane.b32.xlu1 %v1395_v31, %s1601_s29 }
 0x6e0   : > { %765 = vrot.lane.b32.xlu2 %v1391_v34, %s1601_s29 }
 0x72a   : > { %v681_v1 = vpop.permute.xlu2 %680 }
 0x72b   : > { %v689_v2 = vsel %vm290_vm0, %v681_v1, 0  ;;  %v1531_v1 = vld [vmem:[%s2020_s1 + $0x24] sm:$0xf] }
 0x72c   : > { %697 = vmatpush.bf16.xpose.msra.mxu0 %v689_v2  ;;  %v1401_v2 = vld [vmem:[%s2020_s1 + $0x28] sm:$0xf0] }
 0x732   : > { %v730_v28 = vpop.permute.xlu2 %729 }
 0x73a   : > { %v766_v30 = vpop.permute.xlu2 %765 }
 0x742   : > { %v679_v3 = vpop.permute.xlu1 %678 }
 0x743   : > { %v686_v4 = vsel %vm290_vm0, %v679_v3, 0  ;;  %v1404_v3 = vor.u32 %v1531_v1, %v1401_v2 }
 0x744   : > { %698 = vmatpush.bf16.xpose.msra.mxu0 %v686_v4  ;;  %v1542_v4 = vld [vmem:[%s2021_s2 + $0x78] sm:$0xff] }
 0x745   : > { %891 = vmatpush.bf16.msrb.mxu3 %v1542_v4 }
 0x74a   : > { %v768_v29 = vpop.permute.xlu1 %767 }
 0x74b   : > { %1397 = vmatmul.msk.bf16.vlgmr.msra.gmra.mxu0 %vm290_vm0, %v675_v5 }
 0x74c   : > { %780 = vmatpush.bf16.msrb.mxu0 %v768_v29 }
 0x750   : > { %781 = vmatpush.bf16.msrb.mxu0 %v766_v30 }
 0x7c8   : > { %v700_v6 = vpop.f32.mrf.mxu0 }
 0x7c9   : > { %v701_v8 = vadd.f32 %v700_v6, %v1737_v41 }
 0x7cb   : > { %v704_v10 = vsel %vm290_vm0, %v701_v8, -inf }
 0x7cc   : > { %705 = vmax.xlane.f32.xlu0 %v704_v10 }
 0x7d0   : > { %v702_v11 = vpop.f32.mrf.mxu0 }
 0x7d1   : > { %v1540_v11 = vld [vmem:[%s2021_s2 + $0x68] sm:$0xff] }
 0x7e0   : > { %731 = vrot.lane.b32.xlu0 %v674_v17, %s1602_s20  ;;  %v1538_v17 = vld [vmem:[%s2021_s2 + $0x58] sm:$0xff] }
 0x83f   : > { %v706_v18 = vpop.xlane.xlu0 %705 }
 0x840   : > { %v707_v20 = vsub.f32 %v701_v8, %v706_v18  ;;  %v1541_v8 = vld [vmem:[%s2021_s2 + $0x70] sm:$0xff] }
 0x841   : > { %892 = vmatpush.bf16.msrb.mxu3 %v1541_v8  ;;  %v927_v8 = vperm.slane %v1856_v51, 3 }
 0x842   : > { %v708_v21 = vmul.f32 1.442695, %v707_v20  ;;  %v1537_v20 = vld [vmem:[%s2021_s2 + $0x50] sm:$0xff] }
 0x844   : > { %1577 = vpow2.f32 %v708_v21 }
 0x845   : > { %893 = vmatpush.bf16.msrb.mxu3 %v1540_v11  ;;  %v929_v11 = vperm.slane %v1856_v51, 4 }
 0x84a   : > { %v1578_v22 = vpop.eup %1577 }
 0x84b   : > { %v710_v23 = vpack.c.bf16 %v1578_v22, %v1578_v22 }
 0x84d   : > { %1398 = vmatmul.msk.bf16.vlgmr.msra.gmra.mxu2 %vm290_vm0, %v710_v23 }
 0x852   : > { %v732_v26 = vpop.permute.xlu0 %731 }
 0x853   : > { %741 = vmatpush.bf16.msrb.mxu1 %v732_v26 }
 0x857   : > { %742 = vmatpush.bf16.msrb.mxu1 %v730_v28  ;;  %v812_v28 = vperm.slane %v1856_v51, 2 }
 0x85a   : > { %1399 = vmatmul.msk.bf16.vlgmr.msrb.gmra.mxu1 %vm290_vm0, %v710_v23  ;;  %v810_v23 = vperm.slane %v1856_v51, 1 }
 0x8d0   : > { %v723_v31 = vpop.f32.mrf.mxu2 }
 0x8d1   : > { %1579 = vrcp.f32 %v723_v31  ;;  %v759_v38 = vand.u32 2147483648, %v723_v31  ;;  %v757_v40 = vand.u32 2147483647, %v723_v31  ;;  %vm753_vm13 = vweird.f32 %v723_v31 }
 0x8d3   : > { %v760_v43 = vor.u32 1.1754944e-38, %v759_v38  ;;  %vm758_vm15 = vcmp.eq.f32.partialorder %v757_v40, 8.507059e+37 }
 0x8d7   : > { %v1580_v9 = vpop.eup %1579  ;;  %v744_v32 = vpop.f32.mrf.mxu1 }
 0x8d8   : > { %v749_v34 = vmul.f32 %v1580_v9, %v723_v31  ;;  %v725_v36 = vpop.f32.mrf.mxu2  ;;  %vm754_vm12 = vweird.f32 %v1580_v9 }
 0x8d9   : > { %vm755_vm14 = vmor %vm753_vm13, %vm754_vm12  ;;  %v815_v36 = vperm.slane %v1856_v51, 6 }
 0x8da   : > { %v750_v37 = vsub.f32 1.0, %v749_v34  ;;  %v1535_v34 = vld [vmem:[%s2021_s2 + $0x40] sm:$0xff] }
 0x8dc   : > { %v751_v39 = vmul.f32 %v1580_v9, %v750_v37 }
 0x8de   : > { %v752_v42 = vadd.f32 %v1580_v9, %v751_v39 }
 0x8df   : > { %v746_v44 = vpop.f32.mrf.mxu1 }
 0x8e0   : > { %v756_v45 = vsel %vm755_vm14, %v1580_v9, %v752_v42 }
 0x8e1   : > { %v761_v48 = vsel %vm758_vm15, %v760_v43, %v756_v45  ;;  %v842_v43 = vperm.slane %v1856_v51, 5 }
 0x8e2   : > { %v762_v49 = vmul.f32 %v761_v48, %v744_v32  ;;  %v1536_v32 = vld [vmem:[%s2021_s2 + $0x48] sm:$0xff] }
 0x8e4   : > { %v763_v50 = vpack.c.bf16 %v762_v49, %v762_v49 }
 0x8e6   : > { %1400 = vmatmul.msk.bf16.vlgmr.msrb.gmra.mxu0 %vm290_vm0, %v763_v50 }
 0x963   : > { %v783_v54 = vpop.f32.mrf.mxu0 }
 0x964   : > { %v784_v55 = vadd.f32 %v783_v54, %v764_v52 }
 0x966   : > { %v787_v56 = vadd.f32 %v784_v55, %v1826_v53  ;;  %v1405_v53 = vld [vmem:[%s2020_s1 + $0x38] sm:$0xf0] }
 0x967   : > { %v1408_v0 = vor.u32 %v1533_v63, %v1405_v53 }
 0x968   : > { %v788_v57 = vsel %vm290_vm0, %v787_v56, 0.0 }
 0x969   : > { %789 = vadd.xlane.f32.xlu1 %v788_v57  ;;  %833 = vmatpush.bf16.msrb.mxu2 %v1408_v0 }
 0x96b   : > { %v785_v58 = vpop.f32.mrf.mxu0 }
 0x96c   : > { %v1469_v58 = vld [vmem:[%s2020_s1 + $0x50] sm:$0xf] }
 0x96d   : > { %834 = vmatpush.bf16.msrb.mxu2 %v1404_v3 }
 0x971   : > { %1041 = vmatpush.bf16.msra.mxu2 %v1742_v46  ;;  %v1539_v46 = vld [vmem:[%s2021_s2 + $0x60] sm:$0xff] }
 0x972   : > { %894 = vmatpush.bf16.msrb.mxu3 %v1539_v46 }
 0x975   : > { %1042 = vmatpush.bf16.msra.mxu2 %v1746_v47 }
 0x976   : > { %895 = vmatpush.bf16.msrb.mxu3 %v1538_v17 }
 0x97a   : > { %896 = vmatpush.bf16.msrb.mxu3 %v1537_v20 }
 0x97e   : > { %897 = vmatpush.bf16.msrb.mxu3 %v1536_v32 }
 0x982   : > { %898 = vmatpush.bf16.msrb.mxu3 %v1535_v34 }
 0x9dc   : > { %v790_v59 = vpop.xlane.xlu1 %789 }
 0x9dd   : > { %v791_v60 = vmul.f32 %v790_v59, %v1760_v27  ;;  %v1546_v59 = vld [vmem:[%s2020_s1 + $0x54] sm:$0xf0] }
 0x9df   : > { %v792_v7 = vsub.f32 %v787_v56, %v791_v60  ;;  %v1470_v60 = vor.u32 %v1546_v59, %v1469_v58 }
 0x9e1   : > { %v793_v61 = vmul.f32 %v792_v7, %v792_v7  ;;  %977 = vmatpush.bf16.msra.mxu1 %v1470_v60 }
 0x9e3   : > { %v794_v62 = vsel %vm290_vm0, %v793_v61, 0.0  ;;  %v1544_v61 = vld [vmem:[%s2020_s1 + $0x44] sm:$0xf0] }
 0x9e4   : > { %795 = vadd.xlane.f32.xlu0 %v794_v62 }
 0xa57   : > { %v796_v5 = vpop.xlane.xlu0 %795 }
 0xa58   : > { %v797_v6 = vmul.f32 %v796_v5, %v1760_v27 }
 0xa5a   : > { %v798_v10 = vadd.f32 1e-05, %v797_v6 }
 0xa5c   : > { %1581 = vrsqrt.f32 %v798_v10  ;;  %vm805_vm2 = vweird.f32 %v798_v10 }
 0xa62   : > { %v1582_v15 = vpop.eup %1581 }
 0xa63   : > { %v800_v16 = vmul.f32 %v1582_v15, %v798_v10  ;;  %vm806_vm1 = vweird.f32 %v1582_v15 }
 0xa64   : > { %vm807_vm3 = vmor %vm805_vm2, %vm806_vm1 }
 0xa65   : > { %v801_v18 = vmul.f32 %v1582_v15, %v800_v16 }
 0xa67   : > { %v802_v47 = vmul.f32 0.5, %v801_v18 }
 0xa69   : > { %v803_v21 = vsub.f32 1.5, %v802_v47 }
 0xa6b   : > { %v804_v22 = vmul.f32 %v1582_v15, %v803_v21 }
 0xa6d   : > { %v808_v26 = vsel %vm807_vm3, %v1582_v15, %v804_v22 }
 0xa6e   : > { %v809_v29 = vmul.f32 %v808_v26, %v792_v7  ;;  %v1465_v7 = vld [vmem:[%s2020_s1 + $0x40] sm:$0xf] }
 0xa6f   : > { %v1466_v62 = vor.u32 %v1544_v61, %v1465_v7 }
 0xa70   : > { %v811_v30 = vmul.f32 %v810_v23, %v809_v29 }
 0xa71   : > { %978 = vmatpush.bf16.msra.mxu1 %v1466_v62 }
 0xa72   : > { %v813_v31 = vadd.f32 %v812_v28, %v811_v30 }
 0xa74   : > { %v814_v9 = vpack.c.bf16 %v813_v31, %v813_v31 }
 0xa76   : > { %1409 = vmatmul.msk.bf16.vlgmr.msrb.gmra.mxu2 %vm290_vm0, %v814_v9 }
 0xaf9   : > { %v836_v37 = vpop.f32.mrf.mxu2 }
 0xafa   : > { %v837_v38 = vadd.f32 %v836_v37, %v815_v36 }
 0xafc   : > { %v840_v39 = vmax.f32 %v837_v38, 0.0 }
 0xafe   : > { %v841_v40 = vpack.c.bf16 %v840_v39, %v840_v39 }
 0xb00   : > { %899 = vmatmul.bf16.vlgmr.msrb.gmra.mxu3 %v841_v40 }
 0xb01   : > { %v838_v42 = vpop.f32.mrf.mxu2 }
 0xb83   : > { %v900_v44 = vpop.f32.mrf.mxu3 }
 0xb84   : > { %v901_v45 = vadd.f32 %v900_v44, %v842_v43 }
 0xb86   : > { %v904_v48 = vadd.f32 %v901_v45, %v813_v31 }
 0xb88   : > { %v905_v49 = vsel %vm290_vm0, %v904_v48, 0.0 }
 0xb89   : > { %906 = vadd.xlane.f32.xlu2 %v905_v49 }
 0xb8b   : > { %v902_v50 = vpop.f32.mrf.mxu3 }
 0xbfc   : > { %v907_v52 = vpop.xlane.xlu2 %906 }
 0xbfd   : > { %v908_v54 = vmul.f32 %v907_v52, %v1760_v27 }
 0xbff   : > { %v909_v55 = vsub.f32 %v904_v48, %v908_v54 }
 0xc01   : > { %v910_v56 = vmul.f32 %v909_v55, %v909_v55 }
 0xc03   : > { %v911_v57 = vsel %vm290_vm0, %v910_v56, 0.0 }
 0xc04   : > { %912 = vadd.xlane.f32.xlu1 %v911_v57 }
 0xc77   : > { %v913_v63 = vpop.xlane.xlu1 %912 }
 0xc78   : > { %v914_v53 = vmul.f32 %v913_v63, %v1760_v27 }
 0xc7a   : > { %v915_v0 = vadd.f32 1e-05, %v914_v53  ;;  %v1955_v53 = vld [vmem:[%s2022_s3 + $0x10] sm:$0xff] }
 0xc7c   : > { %1583 = vrsqrt.f32 %v915_v0  ;;  %vm922_vm5 = vweird.f32 %v915_v0 }
 0xc82   : > { %v1584_v1 = vpop.eup %1583 }
 0xc83   : > { %v917_v2 = vmul.f32 %v1584_v1, %v915_v0  ;;  %vm923_vm4 = vweird.f32 %v1584_v1  ;;  %v1085_v0 = vperm.slane %v1955_v53, 0 }
 0xc84   : > { %vm924_vm6 = vmor %vm922_vm5, %vm923_vm4 }
 0xc85   : > { %v918_v3 = vmul.f32 %v1584_v1, %v917_v2 }
 0xc87   : > { %v919_v4 = vmul.f32 0.5, %v918_v3 }
 0xc89   : > { %v920_v5 = vsub.f32 1.5, %v919_v4 }
 0xc8b   : > { %v921_v6 = vmul.f32 %v1584_v1, %v920_v5 }
 0xc8d   : > { %v925_v10 = vsel %vm924_vm6, %v1584_v1, %v921_v6 }
 0xc8e   : > { %v926_v46 = vmul.f32 %v925_v10, %v909_v55 }
 0xc90   : > { %v928_v15 = vmul.f32 %v927_v8, %v926_v46 }
 0xc92   : > { %v1925_v16 = vadd.f32 %v929_v11, %v928_v15  ;;  %v1545_v15 = vld [vmem:[%s2020_s1 + $0x54] sm:$0xf] }
 0xc94   : > { %v955_v17 = vpack.c.bf16 %v1925_v16, %v1925_v16 }
 0xc96   : > { %1471 = vmatmul.msk.bf16.vlgmr.msra.gmra.mxu1 %vm290_vm0, %v955_v17 }
 0xd13   : > { %v980_v18 = vpop.f32.mrf.mxu1 }
 0xd14   : > { %v986_v47 = vmul.f32 %v980_v18, %v1699_v12  ;;  %v987_v20 = vmul.f32 %v980_v18, %v1703_v14  ;;  %v984_v21 = vmul.f32 %v980_v18, %v1701_v13  ;;  %v985_v22 = vmul.f32 %v980_v18, %v1708_v19 }
 0xd15   : > { %v990_v26 = vmul.f32 %v980_v18, %v1727_v35  ;;  %v991_v28 = vmul.f32 %v980_v18, %v1725_v33  ;;  %v996_v31 = vpack.c.bf16 %v980_v18, %v980_v18  ;;  %v992_v34 = vmul.f32 %v980_v18, %v1717_v25 }
 0xd16   : > { %v989_v23 = vpack.c.bf16 %v987_v20, %v986_v47  ;;  %v988_v51 = vpack.c.bf16 %v985_v22, %v984_v21  ;;  %v993_v36 = vmul.f32 %v980_v18, %v1713_v24  ;;  %v1543_v18 = vld [vmem:[%s2020_s1 + $0x44] sm:$0xf]  ;;  %v1476_v47 = vld [vmem:[%s2020_s1 + $0x48] sm:$0xf0]  ;;  %v1554_v21 = vld [vmem:[%s2021_s2 + $0xb8] sm:$0xff] }
 0xd17   : > { %v994_v30 = vpack.c.bf16 %v991_v28, %v990_v26  ;;  %v1479_v20 = vor.u32 %v1543_v18, %v1476_v47  ;;  %1212 = vmatpush.bf16.msra.mxu3 %v1554_v21  ;;  %v1552_v28 = vld [vmem:[%s2021_s2 + $0xa8] sm:$0xff] }
 0xd18   : > { %1001 = vrot.lane.b32.xlu0 %v989_v23, %s1603_s23  ;;  %999 = vrot.lane.b32.xlu2 %v988_v51, %s1603_s23  ;;  %v995_v37 = vpack.c.bf16 %v993_v36, %v992_v34  ;;  %v1553_v51 = vld [vmem:[%s2021_s2 + $0xb0] sm:$0xff]  ;;  %v1133_v34 = vperm.slane %v1955_v53, 2 }
 0xd1b   : > { %v982_v29 = vpop.f32.mrf.mxu1  ;;  %1213 = vmatpush.bf16.msra.mxu3 %v1553_v51 }
 0xd1c   : > { %v1551_v29 = vld [vmem:[%s2021_s2 + $0xa0] sm:$0xff] }
 0xd1f   : > { %1214 = vmatpush.bf16.msra.mxu3 %v1552_v28 }
 0xd20   : > { %1050 = vrot.lane.b32.xlu0 %v994_v30, %s1602_s20  ;;  %1088 = vrot.lane.b32.xlu2 %v1470_v60, %s1601_s29 }
 0xd23   : > { %1215 = vmatpush.bf16.msra.mxu3 %v1551_v29 }
 0xd28   : > { %1086 = vrot.lane.b32.xlu0 %v1466_v62, %s1601_s29 }
 0xd72   : > { %v1000_v14 = vpop.permute.xlu2 %999 }
 0xd73   : > { %v1007_v19 = vsel %vm290_vm0, %v1000_v14, 0 }
 0xd7a   : > { %v1089_v25 = vpop.permute.xlu2 %1088 }
 0xd8a   : > { %v1002_v12 = vpop.permute.xlu0 %1001 }
 0xd8b   : > { %v1010_v13 = vsel %vm290_vm0, %v1002_v12, 0 }
 0xd8c   : > { %1018 = vmatpush.bf16.xpose.msra.mxu0 %v1010_v13  ;;  %v1550_v13 = vld [vmem:[%s2021_s2 + $0x98] sm:$0xff] }
 0xd8d   : > { %1216 = vmatpush.bf16.msra.mxu3 %v1550_v13 }
 0xd92   : > { %v1051_v44 = vpop.permute.xlu0 %1050 }
 0xd94   : > { %1019 = vmatpush.bf16.xpose.msra.mxu0 %v1007_v19 }
 0xd9a   : > { %v1087_v24 = vpop.permute.xlu0 %1086 }
 0xd9b   : > { %1472 = vmatmul.msk.bf16.vlgmr.msra.gmra.mxu0 %vm290_vm0, %v996_v31  ;;  %v1549_v31 = vld [vmem:[%s2021_s2 + $0x90] sm:$0xff] }
 0xd9c   : > { %1101 = vmatpush.bf16.msrb.mxu0 %v1089_v25  ;;  %1217 = vmatpush.bf16.msra.mxu3 %v1549_v31 }
 0xda0   : > { %1102 = vmatpush.bf16.msrb.mxu0 %v1087_v24 }
 0xe18   : > { %v1021_v33 = vpop.f32.mrf.mxu0 }
 0xe19   : > { %v1022_v35 = vadd.f32 %v1021_v33, %v1737_v41 }
 0xe1b   : > { %v1025_v9 = vsel %vm290_vm0, %v1022_v35, -inf }
 0xe1c   : > { %1026 = vmax.xlane.f32.xlu1 %v1025_v9  ;;  %v1131_v9 = vperm.slane %v1955_v53, 1 }
 0xe20   : > { %v1023_v32 = vpop.f32.mrf.mxu0 }
 0xe35   : > { %1052 = vrot.lane.b32.xlu1 %v995_v37, %s1602_s20 }
 0xe8f   : > { %v1027_v38 = vpop.xlane.xlu1 %1026 }
 0xe90   : > { %v1028_v39 = vsub.f32 %v1022_v35, %v1027_v38 }
 0xe92   : > { %v1029_v40 = vmul.f32 1.442695, %v1028_v39 }
 0xe94   : > { %1585 = vpow2.f32 %v1029_v40  ;;  %v1548_v40 = vld [vmem:[%s2021_s2 + $0x88] sm:$0xff] }
 0xe95   : > { %1218 = vmatpush.bf16.msra.mxu3 %v1548_v40 }
 0xe9a   : > { %v1586_v42 = vpop.eup %1585 }
 0xe9b   : > { %v1031_v43 = vpack.c.bf16 %v1586_v42, %v1586_v42  ;;  %v1547_v42 = vld [vmem:[%s2021_s2 + $0x80] sm:$0xff] }
 0xe9c   : > { %1219 = vmatpush.bf16.msra.mxu3 %v1547_v42 }
 0xe9d   : > { %1473 = vmatmul.msk.bf16.vlgmr.msra.gmra.mxu2 %vm290_vm0, %v1031_v43 }
 0xea7   : > { %v1053_v41 = vpop.permute.xlu1 %1052 }
 0xea8   : > { %1062 = vmatpush.bf16.msrb.mxu1 %v1053_v41 }
 0xeac   : > { %1063 = vmatpush.bf16.msrb.mxu1 %v1051_v44 }
 0xeaf   : > { %1474 = vmatmul.msk.bf16.vlgmr.msrb.gmra.mxu1 %vm290_vm0, %v1031_v43  ;;  %v1136_v43 = vperm.slane %v1955_v53, 6 }
 0xf20   : > { %v1044_v45 = vpop.f32.mrf.mxu2 }
 0xf21   : > { %1587 = vrcp.f32 %v1044_v45  ;;  %v1080_v54 = vand.u32 2147483648, %v1044_v45  ;;  %v1078_v57 = vand.u32 2147483647, %v1044_v45  ;;  %vm1074_vm8 = vweird.f32 %v1044_v45 }
 0xf23   : > { %v1081_v59 = vor.u32 1.1754944e-38, %v1080_v54  ;;  %vm1079_vm10 = vcmp.eq.f32.partialorder %v1078_v57, 8.507059e+37 }
 0xf27   : > { %v1588_v48 = vpop.eup %1587 }
 0xf28   : > { %v1070_v49 = vmul.f32 %v1588_v48, %v1044_v45  ;;  %v1046_v50 = vpop.f32.mrf.mxu2  ;;  %vm1075_vm7 = vweird.f32 %v1588_v48 }
 0xf29   : > { %vm1076_vm9 = vmor %vm1074_vm8, %vm1075_vm7 }
 0xf2a   : > { %v1071_v52 = vsub.f32 1.0, %v1070_v49 }
 0xf2c   : > { %v1065_v55 = vpop.f32.mrf.mxu1  ;;  %v1072_v56 = vmul.f32 %v1588_v48, %v1071_v52 }
 0xf2e   : > { %v1073_v58 = vadd.f32 %v1588_v48, %v1072_v56 }
 0xf30   : > { %v1077_v60 = vsel %vm1076_vm9, %v1588_v48, %v1073_v58  ;;  %v1163_v48 = vperm.slane %v1955_v53, 5 }
 0xf31   : > { %v1082_v7 = vsel %vm1079_vm10, %v1081_v59, %v1077_v60 }
 0xf32   : > { %v1083_v61 = vmul.f32 %v1082_v7, %v1065_v55 }
 0xf34   : > { %v1084_v62 = vpack.c.bf16 %v1083_v61, %v1083_v61  ;;  %v1067_v63 = vpop.f32.mrf.mxu1 }
 0xf36   : > { %1475 = vmatmul.msk.bf16.vlgmr.msrb.gmra.mxu0 %vm290_vm0, %v1084_v62 }
 0xfb3   : > { %v1104_v1 = vpop.f32.mrf.mxu0 }
 0xfb4   : > { %v1105_v2 = vadd.f32 %v1104_v1, %v1085_v0 }
 0xfb6   : > { %v1108_v3 = vadd.f32 %v1105_v2, %v1925_v16  ;;  %v1480_v16 = vld [vmem:[%s2020_s1 + $0x58] sm:$0xf0] }
 0xfb7   : > { %v1483_v17 = vor.u32 %v1545_v15, %v1480_v16 }
 0xfb8   : > { %v1109_v4 = vsel %vm290_vm0, %v1108_v3, 0.0 }
 0xfb9   : > { %1110 = vadd.xlane.f32.xlu2 %v1109_v4  ;;  %1154 = vmatpush.bf16.msrb.mxu2 %v1483_v17 }
 0xfbb   : > { %v1106_v5 = vpop.f32.mrf.mxu0 }
 0xfbc   : > { %v1248_v5 = vperm.slane %v1955_v53, 3 }
 0xfbd   : > { %1155 = vmatpush.bf16.msrb.mxu2 %v1479_v20 }
0x102c   : > { %v1111_v6 = vpop.xlane.xlu2 %1110 }
0x102d   : > { %v1112_v8 = vmul.f32 %v1111_v6, %v1760_v27 }
0x102f   : > { %v1113_v10 = vsub.f32 %v1108_v3, %v1112_v8  ;;  %v1250_v8 = vperm.slane %v1955_v53, 4 }
0x1031   : > { %v1114_v11 = vmul.f32 %v1113_v10, %v1113_v10 }
0x1033   : > { %v1115_v46 = vsel %vm290_vm0, %v1114_v11, 0.0 }
0x1034   : > { %1116 = vadd.xlane.f32.xlu0 %v1115_v46 }
0x10a7   : > { %v1117_v22 = vpop.xlane.xlu0 %1116 }
0x10a8   : > { %v1118_v23 = vmul.f32 %v1117_v22, %v1760_v27 }
0x10aa   : > { %v1119_v26 = vadd.f32 1e-05, %v1118_v23 }
0x10ac   : > { %1589 = vrsqrt.f32 %v1119_v26  ;;  %vm1126_vm12 = vweird.f32 %v1119_v26 }
0x10b2   : > { %v1590_v30 = vpop.eup %1589 }
0x10b3   : > { %v1121_v12 = vmul.f32 %v1590_v30, %v1119_v26  ;;  %vm1127_vm11 = vweird.f32 %v1590_v30 }
0x10b4   : > { %vm1128_vm13 = vmor %vm1126_vm12, %vm1127_vm11 }
0x10b5   : > { %v1122_v14 = vmul.f32 %v1590_v30, %v1121_v12 }
0x10b7   : > { %v1123_v19 = vmul.f32 0.5, %v1122_v14 }
0x10b9   : > { %v1124_v33 = vsub.f32 1.5, %v1123_v19 }
0x10bb   : > { %v1125_v35 = vmul.f32 %v1590_v30, %v1124_v33 }
0x10bd   : > { %v1129_v32 = vsel %vm1128_vm13, %v1590_v30, %v1125_v35 }
0x10be   : > { %v1130_v36 = vmul.f32 %v1129_v32, %v1113_v10 }
0x10c0   : > { %v1132_v37 = vmul.f32 %v1131_v9, %v1130_v36 }
0x10c2   : > { %v1134_v38 = vadd.f32 %v1133_v34, %v1132_v37 }
0x10c4   : > { %v1135_v39 = vpack.c.bf16 %v1134_v38, %v1134_v38 }
0x10c6   : > { %1484 = vmatmul.msk.bf16.vlgmr.msrb.gmra.mxu2 %vm290_vm0, %v1135_v39 }
0x1149   : > { %v1157_v41 = vpop.f32.mrf.mxu2 }
0x114a   : > { %v1158_v44 = vadd.f32 %v1157_v41, %v1136_v43 }
0x114c   : > { %v1161_v25 = vmax.f32 %v1158_v44, 0.0 }
0x114e   : > { %v1162_v24 = vpack.c.bf16 %v1161_v25, %v1161_v25 }
0x1150   : > { %1220 = vmatmul.bf16.vlgmr.msra.gmra.mxu3 %v1162_v24 }
0x1151   : > { %v1159_v45 = vpop.f32.mrf.mxu2 }
0x11d3   : > { %v1221_v49 = vpop.f32.mrf.mxu3 }
0x11d4   : > { %v1222_v50 = vadd.f32 %v1221_v49, %v1163_v48 }
0x11d6   : > { %v1225_v52 = vadd.f32 %v1222_v50, %v1134_v38 }
0x11d8   : > { %v1226_v54 = vsel %vm290_vm0, %v1225_v52, 0.0 }
0x11d9   : > { %1227 = vadd.xlane.f32.xlu1 %v1226_v54 }
0x11db   : > { %v1223_v55 = vpop.f32.mrf.mxu3 }
0x124c   : > { %v1228_v56 = vpop.xlane.xlu1 %1227 }
0x124d   : > { %v1229_v57 = vmul.f32 %v1228_v56, %v1760_v27 }
0x124f   : > { %v1230_v58 = vsub.f32 %v1225_v52, %v1229_v57 }
0x1251   : > { %v1231_v59 = vmul.f32 %v1230_v58, %v1230_v58 }
0x1253   : > { %v1232_v60 = vsel %vm290_vm0, %v1231_v59, 0.0 }
0x1254   : > { %1233 = vadd.xlane.f32.xlu2 %v1232_v60 }
0x12c7   : > { %v1234_v7 = vpop.xlane.xlu2 %1233 }
0x12c8   : > { %v1235_v61 = vmul.f32 %v1234_v7, %v1760_v27 }
0x12ca   : > { %v1236_v62 = vadd.f32 1e-05, %v1235_v61 }
0x12cc   : > { %1591 = vrsqrt.f32 %v1236_v62  ;;  %vm1243_vm15 = vweird.f32 %v1236_v62 }
0x12d2   : > { %v1592_v63 = vpop.eup %1591 }
0x12d3   : > { %v1238_v0 = vmul.f32 %v1592_v63, %v1236_v62  ;;  %vm1244_vm14 = vweird.f32 %v1592_v63 }
0x12d4   : > { %vm1245_vm1 = vmor %vm1243_vm15, %vm1244_vm14 }
0x12d5   : > { %v1239_v1 = vmul.f32 %v1592_v63, %v1238_v0 }
0x12d7   : > { %v1240_v2 = vmul.f32 0.5, %v1239_v1 }
0x12d9   : > { %v1241_v3 = vsub.f32 1.5, %v1240_v2 }
0x12db   : > { %v1242_v4 = vmul.f32 %v1592_v63, %v1241_v3 }
0x12dd   : > { %v1246_v6 = vsel %vm1245_vm1, %v1592_v63, %v1242_v4 }
0x12de   : > { %v1247_v10 = vmul.f32 %v1246_v6, %v1230_v58 }
0x12e0   : > { %v1249_v11 = vmul.f32 %v1248_v5, %v1247_v10 }
0x12e2   : > { %v1251_v27 = vadd.f32 %v1250_v8, %v1249_v11 }
0x12e4   : > { %1252 = vst.msk [vmem:[%s246_s26] sm:$0xff] %vm290_vm0, %v1251_v27 }
0x12e5 PF: > { %s16_s21 = sadd.s32 1, %s1599_s21  }
0x12e6   : > { %p13_p4 = scmp.ge.s32.totalorder %s16_s21, 4  }
0x12e8   :  { %15 = sbr.rel (!%p13_p4) target bundleno = 1 (0x1), region = 80 }

</bundles_post_ra>
